<compile_context>
chip_gen: v5e
topology: v5e:2x2
jax: 0.10.0
libtpu: 0.0.40
codegen_flags: <defaults>
</compile_context>

<pallas_src>
import math
import functools

import jax
import jax.numpy as jnp
from jax.experimental import pallas as pl
from jax.experimental.pallas import tpu as pltpu

# ---------------- model config (small, consistent with the module) ----------------
VOCAB = 64
VPAD = 128            # vocab padded to one full vreg lane width (extra rows are zero)
BLOCK_SIZE = 16
N_EMBD = 32
N_HEAD = 4            # reflex head sharing requires n_head >= n_layer
N_LAYER = 2
EPS = 1e-6

assert N_EMBD % N_HEAD == 0
D_HEAD = N_EMBD // N_HEAD
assert N_HEAD - (N_LAYER - 1) >= 1
assert VOCAB <= VPAD


def _round_up(x, m):
    return (x + m - 1) // m * m


def _self_heads(layer_idx):
    # layer 0 attends with all of its own heads; layer i>0 re-uses i shared K/V heads.
    return N_HEAD if layer_idx == 0 else N_HEAD - layer_idx


# ---------------- host-side weight-slab layout ----------------
# One bf16 slab (matmul weights, (in,out) layout) + one f32 slab (biases / norm rows).
# Row offsets are 16-aligned (bf16 sublane tile) / 8-aligned (f32), so every in-kernel
# unpack is a static, relayout-free slice.
def _build_layouts():
    C, Dh = N_EMBD, D_HEAD
    w, off = {}, 0

    def add_w(name, rows, cols):
        nonlocal off
        w[name] = (off, rows, cols)
        off += _round_up(rows, 16)

    add_w("wte", VPAD, C)                       # tied embedding / lm_head (rows >= VOCAB are 0)
    add_w("wpe", BLOCK_SIZE, C)
    for i in range(N_LAYER):
        sa = _self_heads(i)
        for h in range(N_HEAD):
            add_w(f"L{i}.wq{h}", C, Dh)         # per-head -> results land at lane offset 0
        for h in range(sa):
            add_w(f"L{i}.wk{h}", C, Dh)
            add_w(f"L{i}.wv{h}", C, Dh)
        for h in range(N_HEAD):
            add_w(f"L{i}.proj{h}", Dh, C)       # per-head row block of c_proj
        add_w(f"L{i}.fc", C, 4 * C)
        add_w(f"L{i}.glu_a", 4 * C, 4 * C)      # SwiGLU "hidden" half
        add_w(f"L{i}.glu_g", 4 * C, 4 * C)      # SwiGLU "gate" half
        add_w(f"L{i}.mproj", 4 * C, C)
    w_rows = _round_up(off, 16)

    b, boff = {}, 0

    def add_b(name, cols):
        nonlocal boff
        b[name] = (boff, cols)
        boff += 8                               # 8-row (f32 tile) aligned slots

    add_b("ln_f", C)
    for i in range(N_LAYER):
        sa = _self_heads(i)
        add_b(f"L{i}.ln1", C)
        for h in range(N_HEAD):
            add_b(f"L{i}.bq{h}", Dh)
        for h in range(sa):
            add_b(f"L{i}.bk{h}", Dh)
            add_b(f"L{i}.bv{h}", Dh)
        add_b(f"L{i}.proj_b", C)
        add_b(f"L{i}.ln2", C)
        add_b(f"L{i}.fc_b", 4 * C)
        add_b(f"L{i}.glu_a_b", 4 * C)
        add_b(f"L{i}.glu_g_b", 4 * C)
        add_b(f"L{i}.mproj_b", C)
    b_rows = _round_up(boff, 8)
    return w, w_rows, b, b_rows


W_LAYOUT, W_ROWS, B_LAYOUT, B_ROWS = _build_layouts()


# ---------------- fused whole-model Pallas kernel ----------------
def _gpt_kernel(idx_ref, wslab_ref, bslab_ref, out_ref, *, T, chunk_b):
    f32, bf16 = jnp.float32, jnp.bfloat16
    C, H, Dh = N_EMBD, N_HEAD, D_HEAD
    BTc = chunk_b * T                           # batches folded along sublanes
    log2_t = T.bit_length() - 1                 # T asserted power of two in wrapper

    def wv(name):                               # bf16 weight block (static aligned slice)
        off, rows, cols = W_LAYOUT[name]
        return wslab_ref[off:off + rows, 0:cols]

    def bv(name):                               # f32 (1, cols) bias / norm row
        off, cols = B_LAYOUT[name]
        return bslab_ref[off:off + 1, 0:cols]

    def rmsnorm(v, name):
        ms = jnp.mean(v * v, axis=-1, keepdims=True)
        return v * jax.lax.rsqrt(ms + EPS) * bv(name)

    def linear(v_f32, wname, bname):
        r = jnp.dot(v_f32.astype(bf16), wv(wname), preferred_element_type=f32)
        return r + bv(bname)

    # ---- embedding: one-hot matmul against the zero-padded tied table (exact) ----
    ids = idx_ref[0]                                                  # (BTc, 1) int32
    viota = jax.lax.broadcasted_iota(jnp.int32, (BTc, VPAD), 1)
    onehot = jnp.where(viota == ids, f32(1.0), f32(0.0)).astype(bf16)
    x = jnp.dot(onehot, wv("wte"), preferred_element_type=f32)        # (BTc, C)
    wpe_off = W_LAYOUT["wpe"][0]
    pos = wslab_ref[wpe_off:wpe_off + T, 0:C].astype(f32)             # (T, C)
    if chunk_b > 1:
        pos = jnp.concatenate([pos] * chunk_b, axis=0)                # sublane stack, cheap
    x = x + pos                                                       # dropout == 0 (eval)

    # ---- block-diagonal causal additive bias, built once, reused by all heads/layers ----
    r_i = jax.lax.broadcasted_iota(jnp.int32, (BTc, BTc), 0)
    c_i = jax.lax.broadcasted_iota(jnp.int32, (BTc, BTc), 1)
    allowed = c_i <= r_i
    if chunk_b > 1:                                                   # restrict to same batch
        allowed = jnp.logical_and(
            allowed, jnp.right_shift(r_i, log2_t) == jnp.right_shift(c_i, log2_t))
    neg_bias = jnp.where(allowed, f32(0.0), f32(-1e30))
    scale = f32(1.0 / math.sqrt(Dh))

    shared_k, shared_v = [], []                 # reflex-shared K/V heads, most recent first

    for i in range(N_LAYER):
        sa = _self_heads(i)

        # ----- attention -----
        n1 = rmsnorm(x, f"L{i}.ln1")
        n1_bf = n1.astype(bf16)

        def head(kind, h):
            r = jnp.dot(n1_bf, wv(f"L{i}.w{kind}{h}"), preferred_element_type=f32)
            return r + bv(f"L{i}.b{kind}{h}")

        q_heads = [head("q", h) for h in range(H)]
        k_heads = [head("k", h) for h in range(sa)] + shared_k
        v_heads = [head("v", h) for h in range(sa)] + shared_v
        new_k, new_v = k_heads[sa - 1], v_heads[sa - 1]               # published to later layers

        # per-head scores, stacked along sublanes -> one softmax for all heads
        s_list = []
        for h in range(H):
            s_h = jax.lax.dot_general(
                q_heads[h].astype(bf16), k_heads[h].astype(bf16),
                (((1,), (1,)), ((), ())), preferred_element_type=f32)
            s_list.append(s_h * scale + neg_bias)
        s = jnp.concatenate(s_list, axis=0)                           # (H*BTc, BTc)
        m = jnp.max(s, axis=-1, keepdims=True)
        p = jnp.exp(s - m)
        denom = jnp.sum(p, axis=-1, keepdims=True)
        p = (p * pl.reciprocal(denom, approx=True)).astype(bf16)

        # per-head PV + per-head projection accumulation (no lane concatenation)
        attn_out = None
        for h in range(H):
            p_h = p[h * BTc:(h + 1) * BTc, :]                         # 16-aligned sublane slice
            o_h = jnp.dot(p_h, v_heads[h].astype(bf16), preferred_element_type=f32)
            t_h = jnp.dot(o_h.astype(bf16), wv(f"L{i}.proj{h}"),
                          preferred_element_type=f32)
            attn_out = t_h if attn_out is None else attn_out + t_h
        x = x + attn_out + bv(f"L{i}.proj_b")

        shared_k = [new_k] + shared_k
        shared_v = [new_v] + shared_v

        # ----- MLP: fc -> SwiGLU -> proj -----
        n2 = rmsnorm(x, f"L{i}.ln2")
        hdn = linear(n2, f"L{i}.fc", f"L{i}.fc_b")                    # (BTc, 4C)
        a = linear(hdn, f"L{i}.glu_a", f"L{i}.glu_a_b")
        g = linear(hdn, f"L{i}.glu_g", f"L{i}.glu_g_b")
        act = a * (g / (1.0 + jnp.exp(-g)))                           # a * SiLU(g), f32
        x = x + linear(act, f"L{i}.mproj", f"L{i}.mproj_b")

    # ---- final norm + tied lm_head on the last position of each sequence ----
    last = jnp.concatenate(
        [x[b * T + T - 1: b * T + T, :] for b in range(chunk_b)], axis=0)   # (chunk_b, C)
    last = rmsnorm(last, "ln_f").astype(bf16)
    logits = jax.lax.dot_general(last, wv("wte"), (((1,), (1,)), ((), ())),
                                 preferred_element_type=f32)          # (chunk_b, VPAD)
    out_ref[...] = logits.reshape(1, chunk_b, VPAD)                   # 128-lane unmasked store


# ---------------- parameters: deterministic synthetic init + host-side packing ----------------
def init_params(key):
    C, Dh = N_EMBD, D_HEAD
    keys = iter(jax.random.split(key, 2 + 5 * N_LAYER))

    def nrm(shape):
        return 0.02 * jax.random.normal(next(keys), shape, jnp.float32)

    wslab = jnp.zeros((W_ROWS, 128), jnp.bfloat16)
    bslab = jnp.zeros((B_ROWS, 128), jnp.float32)

    def put_w(slab, name, mat):
        off, rows, cols = W_LAYOUT[name]
        assert mat.shape[0] <= rows and mat.shape[1] <= cols
        return slab.at[off:off + mat.shape[0], :mat.shape[1]].set(mat.astype(jnp.bfloat16))

    def put_b(slab, name, vec):
        off, cols = B_LAYOUT[name]
        assert vec.shape == (cols,)
        return slab.at[off, :cols].set(vec.astype(jnp.float32))

    wslab = put_w(wslab, "wte", nrm((VOCAB, C)))        # tied embedding / lm_head table
    wslab = put_w(wslab, "wpe", nrm((BLOCK_SIZE, C)))
    bslab = put_b(bslab, "ln_f", jnp.ones((C,), jnp.float32))

    for i in range(N_LAYER):
        sa = _self_heads(i)
        # torch Linear weights are (out, in); store pre-transposed (in, out).
        attn_w = nrm((3 * C, C)).T
        attn_b = jnp.zeros((3 * C,), jnp.float32)
        proj_w = nrm((C, C)).T
        fc_w = nrm((4 * C, C)).T
        glu_w = nrm((8 * C, 4 * C)).T                   # (4C, 8C): [hidden | gate]
        mproj_w = nrm((C, 4 * C)).T

        for h in range(N_HEAD):
            wslab = put_w(wslab, f"L{i}.wq{h}", attn_w[:, h * Dh:(h + 1) * Dh])
            bslab = put_b(bslab, f"L{i}.bq{h}", attn_b[h * Dh:(h + 1) * Dh])
            wslab = put_w(wslab, f"L{i}.proj{h}", proj_w[h * Dh:(h + 1) * Dh, :])
        for h in range(sa):
            wslab = put_w(wslab, f"L{i}.wk{h}", attn_w[:, C + h * Dh:C + (h + 1) * Dh])
            wslab = put_w(wslab, f"L{i}.wv{h}", attn_w[:, 2 * C + h * Dh:2 * C + (h + 1) * Dh])
            bslab = put_b(bslab, f"L{i}.bk{h}", attn_b[C + h * Dh:C + (h + 1) * Dh])
            bslab = put_b(bslab, f"L{i}.bv{h}", attn_b[2 * C + h * Dh:2 * C + (h + 1) * Dh])
        wslab = put_w(wslab, f"L{i}.fc", fc_w)
        wslab = put_w(wslab, f"L{i}.glu_a", glu_w[:, :4 * C])
        wslab = put_w(wslab, f"L{i}.glu_g", glu_w[:, 4 * C:])
        wslab = put_w(wslab, f"L{i}.mproj", mproj_w)
        bslab = put_b(bslab, f"L{i}.ln1", jnp.ones((C,), jnp.float32))
        bslab = put_b(bslab, f"L{i}.ln2", jnp.ones((C,), jnp.float32))
        bslab = put_b(bslab, f"L{i}.proj_b", jnp.zeros((C,), jnp.float32))
        bslab = put_b(bslab, f"L{i}.fc_b", jnp.zeros((4 * C,), jnp.float32))
        bslab = put_b(bslab, f"L{i}.glu_a_b", jnp.zeros((4 * C,), jnp.float32))
        bslab = put_b(bslab, f"L{i}.glu_g_b", jnp.zeros((4 * C,), jnp.float32))
        bslab = put_b(bslab, f"L{i}.mproj_b", jnp.zeros((C,), jnp.float32))

    return {"wslab": wslab, "bslab": bslab}


# ---------------- forward pass: one fused pallas_call ----------------
@functools.partial(jax.jit, static_argnames=("num_chunks",))
def gpt_forward(params, idx, num_chunks=1):
    """Fused forward; returns last-position logits (B, 1, VOCAB).

    num_chunks=1 folds the whole batch into a single grid step (best on the
    single-TensorCore v5e/v6e). On v7x pass num_chunks=2 so each TensorCore
    takes half the batch while still fetching the weight slabs only once.
    """
    B, T = idx.shape
    assert T <= BLOCK_SIZE
    assert T & (T - 1) == 0, "causal mask uses shifts; T must be a power of two"
    assert B % num_chunks == 0
    chunk_b = B // num_chunks
    chunk_bt = chunk_b * T

    # Token ids kept in a tiny column layout so the one-hot is built with a canonical
    # (BTc, VPAD) lane-iota compare + standard matmul (no transposed-LHS dot needed).
    idx3 = idx.astype(jnp.int32).reshape(num_chunks, chunk_bt, 1)
    kernel = functools.partial(_gpt_kernel, T=T, chunk_b=chunk_b)

    out = pl.pallas_call(
        kernel,
        grid=(num_chunks,),
        in_specs=[
            pl.BlockSpec((1, chunk_bt, 1), lambda c: (c, 0, 0)),      # token ids
            pl.BlockSpec((W_ROWS, 128), lambda c: (0, 0)),            # bf16 weight slab
            pl.BlockSpec((B_ROWS, 128), lambda c: (0, 0)),            # f32 bias/norm slab
        ],
        out_specs=pl.BlockSpec((1, chunk_b, VPAD), lambda c: (c, 0, 0)),
        out_shape=jax.ShapeDtypeStruct((num_chunks, chunk_b, VPAD), jnp.float32),
        compiler_params=pltpu.CompilerParams(
            dimension_semantics=("parallel",)),                       # 2 TCs when num_chunks=2
    )(idx3, params["wslab"], params["bslab"])

    return out.reshape(B, 1, VPAD)[:, :, :VOCAB]
    # TODO(synk): training path (targets + cross-entropy) and generate() sampling loop
    # are not implemented; this is the inference logits-only path (dropout = 0).


if __name__ == "__main__":
    key = jax.random.PRNGKey(0)
    pkey, ikey = jax.random.split(key)
    params = init_params(pkey)

    B, T = 2, 8
    idx = jax.random.randint(ikey, (B, T), 0, VOCAB, dtype=jnp.int32)

    logits = gpt_forward(params, idx)
    logits = jax.block_until_ready(logits)

    assert logits.shape == (B, 1, VOCAB)
    assert bool(jnp.all(jnp.isfinite(logits)))
    print("KERNEL_OK")
</pallas_src>

<mosaic_0001>
module attributes {stable_mosaic.version = 11 : i64} {
  func.func @_gpt_kernel(%arg0: i32, %arg1: memref<1x16x1xi32, #tpu.memory_space<vmem>>, %arg2: memref<1808x128xbf16, #tpu.memory_space<vmem>>, %arg3: memref<296x128xf32, #tpu.memory_space<vmem>>, %arg4: memref<1x2x128xf32, #tpu.memory_space<vmem>>) attributes {dimension_semantics = [#tpu.dimension_semantics<parallel>], iteration_bounds = array<i64: 1>, scalar_prefetch = 0 : i64, scratch_operands = 0 : i64, tpu.core_type = #tpu.core_type<tc>, window_params = [{transform_indices = @transform_0, window_bounds = array<i64: 1, 16, 1>}, {pipeline_mode = #tpu.pipeline_mode<synchronous>, transform_indices = @transform_1, window_bounds = array<i64: 1808, 128>}, {pipeline_mode = #tpu.pipeline_mode<synchronous>, transform_indices = @transform_2, window_bounds = array<i64: 296, 128>}, {transform_indices = @transform_3, window_bounds = array<i64: 1, 2, 128>}]} {
    %c0 = arith.constant 0 : index
    %c0_0 = arith.constant 0 : index
    %c0_1 = arith.constant 0 : index
    %0 = vector.load %arg1[%c0, %c0_0, %c0_1] : memref<1x16x1xi32, #tpu.memory_space<vmem>>, vector<1x16x1xi32>
    %1 = vector.shape_cast %0 : vector<1x16x1xi32> to vector<16x1xi32>
    %2 = tpu.iota {dimensions = array<i32: 1>} : vector<16x128xi32>
    %3 = vector.broadcast %1 : vector<16x1xi32> to vector<16x128xi32>
    %4 = arith.cmpi eq, %2, %3 : vector<16x128xi32>
    %cst = arith.constant 1.000000e+00 : f32
    %cst_2 = arith.constant 0.000000e+00 : f32
    %5 = vector.broadcast %cst : f32 to vector<16x128xf32>
    %6 = vector.broadcast %cst_2 : f32 to vector<16x128xf32>
    %7 = arith.select %4, %5, %6 : vector<16x128xi1>, vector<16x128xf32>
    %8 = arith.truncf %7 : vector<16x128xf32> to vector<16x128xbf16>
    %c0_3 = arith.constant 0 : index
    %c0_4 = arith.constant 0 : index
    %9 = vector.load %arg2[%c0_3, %c0_4] : memref<1808x128xbf16, #tpu.memory_space<vmem>>, vector<128x32xbf16>
    %cst_5 = arith.constant dense<0.000000e+00> : vector<16x32xf32>
    %10 = tpu.matmul %8, %9, %cst_5 {dimension_numbers = #tpu.dot_dimension_numbers<[1], [0], [0], [1], [0, 0, 1, 1], [], []>} : vector<16x128xbf16>, vector<128x32xbf16>, vector<16x32xf32> -> vector<16x32xf32>
    %c128 = arith.constant 128 : index
    %c0_6 = arith.constant 0 : index
    %11 = vector.load %arg2[%c128, %c0_6] : memref<1808x128xbf16, #tpu.memory_space<vmem>>, vector<8x32xbf16>
    %12 = arith.extf %11 : vector<8x32xbf16> to vector<8x32xf32>
    %13 = tpu.concatenate %12, %12 in 0 : vector<8x32xf32>, vector<8x32xf32> -> vector<16x32xf32>
    %14 = arith.addf %10, %13 : vector<16x32xf32>
    %15 = tpu.iota {dimensions = array<i32: 0>} : vector<16x16xi32>
    %16 = tpu.iota {dimensions = array<i32: 1>} : vector<16x16xi32>
    %17 = arith.cmpi sle, %16, %15 : vector<16x16xi32>
    %c3_i32 = arith.constant 3 : i32
    %18 = vector.broadcast %c3_i32 : i32 to vector<16x16xi32>
    %19 = arith.shrsi %15, %18 : vector<16x16xi32>
    %c3_i32_7 = arith.constant 3 : i32
    %20 = vector.broadcast %c3_i32_7 : i32 to vector<16x16xi32>
    %21 = arith.shrsi %16, %20 : vector<16x16xi32>
    %22 = arith.cmpi eq, %19, %21 : vector<16x16xi32>
    %23 = arith.andi %17, %22 : vector<16x16xi1>
    %cst_8 = arith.constant 0.000000e+00 : f32
    %cst_9 = arith.constant -1.000000e+30 : f32
    %24 = vector.broadcast %cst_8 : f32 to vector<16x16xf32>
    %25 = vector.broadcast %cst_9 : f32 to vector<16x16xf32>
    %26 = arith.select %23, %24, %25 : vector<16x16xi1>, vector<16x16xf32>
    %27 = arith.mulf %14, %14 : vector<16x32xf32>
    %cst_10 = arith.constant dense<0.000000e+00> : vector<16xf32>
    %28 = vector.multi_reduction <add>, %27, %cst_10 [1] : vector<16x32xf32> to vector<16xf32>
    %29 = vector.shape_cast %28 : vector<16xf32> to vector<16x1xf32>
    %cst_11 = arith.constant 3.200000e+01 : f32
    %30 = vector.broadcast %cst_11 : f32 to vector<16x1xf32>
    %31 = arith.divf %29, %30 : vector<16x1xf32>
    %cst_12 = arith.constant 9.99999997E-7 : f32
    %32 = vector.broadcast %cst_12 : f32 to vector<16x1xf32>
    %33 = arith.addf %31, %32 : vector<16x1xf32>
    %34 = math.rsqrt %33 : vector<16x1xf32>
    %35 = vector.broadcast %34 : vector<16x1xf32> to vector<16x32xf32>
    %36 = arith.mulf %14, %35 : vector<16x32xf32>
    %c8 = arith.constant 8 : index
    %c0_13 = arith.constant 0 : index
    %37 = vector.load %arg3[%c8, %c0_13] : memref<296x128xf32, #tpu.memory_space<vmem>>, vector<1x32xf32>
    %38 = vector.broadcast %37 : vector<1x32xf32> to vector<16x32xf32>
    %39 = arith.mulf %36, %38 : vector<16x32xf32>
    %40 = arith.truncf %39 : vector<16x32xf32> to vector<16x32xbf16>
    %c144 = arith.constant 144 : index
    %c0_14 = arith.constant 0 : index
    %41 = vector.load %arg2[%c144, %c0_14] : memref<1808x128xbf16, #tpu.memory_space<vmem>>, vector<32x8xbf16>
    %cst_15 = arith.constant dense<0.000000e+00> : vector<16x8xf32>
    %42 = tpu.matmul %40, %41, %cst_15 {dimension_numbers = #tpu.dot_dimension_numbers<[1], [0], [0], [1], [0, 0, 1, 1], [], []>} : vector<16x32xbf16>, vector<32x8xbf16>, vector<16x8xf32> -> vector<16x8xf32>
    %c16 = arith.constant 16 : index
    %c0_16 = arith.constant 0 : index
    %43 = vector.load %arg3[%c16, %c0_16] : memref<296x128xf32, #tpu.memory_space<vmem>>, vector<1x8xf32>
    %44 = vector.broadcast %43 : vector<1x8xf32> to vector<16x8xf32>
    %45 = arith.addf %42, %44 : vector<16x8xf32>
    %c176 = arith.constant 176 : index
    %c0_17 = arith.constant 0 : index
    %46 = vector.load %arg2[%c176, %c0_17] : memref<1808x128xbf16, #tpu.memory_space<vmem>>, vector<32x8xbf16>
    %cst_18 = arith.constant dense<0.000000e+00> : vector<16x8xf32>
    %47 = tpu.matmul %40, %46, %cst_18 {dimension_numbers = #tpu.dot_dimension_numbers<[1], [0], [0], [1], [0, 0, 1, 1], [], []>} : vector<16x32xbf16>, vector<32x8xbf16>, vector<16x8xf32> -> vector<16x8xf32>
    %c24 = arith.constant 24 : index
    %c0_19 = arith.constant 0 : index
    %48 = vector.load %arg3[%c24, %c0_19] : memref<296x128xf32, #tpu.memory_space<vmem>>, vector<1x8xf32>
    %49 = vector.broadcast %48 : vector<1x8xf32> to vector<16x8xf32>
    %50 = arith.addf %47, %49 : vector<16x8xf32>
    %c208 = arith.constant 208 : index
    %c0_20 = arith.constant 0 : index
    %51 = vector.load %arg2[%c208, %c0_20] : memref<1808x128xbf16, #tpu.memory_space<vmem>>, vector<32x8xbf16>
    %cst_21 = arith.constant dense<0.000000e+00> : vector<16x8xf32>
    %52 = tpu.matmul %40, %51, %cst_21 {dimension_numbers = #tpu.dot_dimension_numbers<[1], [0], [0], [1], [0, 0, 1, 1], [], []>} : vector<16x32xbf16>, vector<32x8xbf16>, vector<16x8xf32> -> vector<16x8xf32>
    %c32 = arith.constant 32 : index
    %c0_22 = arith.constant 0 : index
    %53 = vector.load %arg3[%c32, %c0_22] : memref<296x128xf32, #tpu.memory_space<vmem>>, vector<1x8xf32>
    %54 = vector.broadcast %53 : vector<1x8xf32> to vector<16x8xf32>
    %55 = arith.addf %52, %54 : vector<16x8xf32>
    %c240 = arith.constant 240 : index
    %c0_23 = arith.constant 0 : index
    %56 = vector.load %arg2[%c240, %c0_23] : memref<1808x128xbf16, #tpu.memory_space<vmem>>, vector<32x8xbf16>
    %cst_24 = arith.constant dense<0.000000e+00> : vector<16x8xf32>
    %57 = tpu.matmul %40, %56, %cst_24 {dimension_numbers = #tpu.dot_dimension_numbers<[1], [0], [0], [1], [0, 0, 1, 1], [], []>} : vector<16x32xbf16>, vector<32x8xbf16>, vector<16x8xf32> -> vector<16x8xf32>
    %c40 = arith.constant 40 : index
    %c0_25 = arith.constant 0 : index
    %58 = vector.load %arg3[%c40, %c0_25] : memref<296x128xf32, #tpu.memory_space<vmem>>, vector<1x8xf32>
    %59 = vector.broadcast %58 : vector<1x8xf32> to vector<16x8xf32>
    %60 = arith.addf %57, %59 : vector<16x8xf32>
    %c272 = arith.constant 272 : index
    %c0_26 = arith.constant 0 : index
    %61 = vector.load %arg2[%c272, %c0_26] : memref<1808x128xbf16, #tpu.memory_space<vmem>>, vector<32x8xbf16>
    %cst_27 = arith.constant dense<0.000000e+00> : vector<16x8xf32>
    %62 = tpu.matmul %40, %61, %cst_27 {dimension_numbers = #tpu.dot_dimension_numbers<[1], [0], [0], [1], [0, 0, 1, 1], [], []>} : vector<16x32xbf16>, vector<32x8xbf16>, vector<16x8xf32> -> vector<16x8xf32>
    %c48 = arith.constant 48 : index
    %c0_28 = arith.constant 0 : index
    %63 = vector.load %arg3[%c48, %c0_28] : memref<296x128xf32, #tpu.memory_space<vmem>>, vector<1x8xf32>
    %64 = vector.broadcast %63 : vector<1x8xf32> to vector<16x8xf32>
    %65 = arith.addf %62, %64 : vector<16x8xf32>
    %c336 = arith.constant 336 : index
    %c0_29 = arith.constant 0 : index
    %66 = vector.load %arg2[%c336, %c0_29] : memref<1808x128xbf16, #tpu.memory_space<vmem>>, vector<32x8xbf16>
    %cst_30 = arith.constant dense<0.000000e+00> : vector<16x8xf32>
    %67 = tpu.matmul %40, %66, %cst_30 {dimension_numbers = #tpu.dot_dimension_numbers<[1], [0], [0], [1], [0, 0, 1, 1], [], []>} : vector<16x32xbf16>, vector<32x8xbf16>, vector<16x8xf32> -> vector<16x8xf32>
    %c64 = arith.constant 64 : index
    %c0_31 = arith.constant 0 : index
    %68 = vector.load %arg3[%c64, %c0_31] : memref<296x128xf32, #tpu.memory_space<vmem>>, vector<1x8xf32>
    %69 = vector.broadcast %68 : vector<1x8xf32> to vector<16x8xf32>
    %70 = arith.addf %67, %69 : vector<16x8xf32>
    %c400 = arith.constant 400 : index
    %c0_32 = arith.constant 0 : index
    %71 = vector.load %arg2[%c400, %c0_32] : memref<1808x128xbf16, #tpu.memory_space<vmem>>, vector<32x8xbf16>
    %cst_33 = arith.constant dense<0.000000e+00> : vector<16x8xf32>
    %72 = tpu.matmul %40, %71, %cst_33 {dimension_numbers = #tpu.dot_dimension_numbers<[1], [0], [0], [1], [0, 0, 1, 1], [], []>} : vector<16x32xbf16>, vector<32x8xbf16>, vector<16x8xf32> -> vector<16x8xf32>
    %c80 = arith.constant 80 : index
    %c0_34 = arith.constant 0 : index
    %73 = vector.load %arg3[%c80, %c0_34] : memref<296x128xf32, #tpu.memory_space<vmem>>, vector<1x8xf32>
    %74 = vector.broadcast %73 : vector<1x8xf32> to vector<16x8xf32>
    %75 = arith.addf %72, %74 : vector<16x8xf32>
    %c464 = arith.constant 464 : index
    %c0_35 = arith.constant 0 : index
    %76 = vector.load %arg2[%c464, %c0_35] : memref<1808x128xbf16, #tpu.memory_space<vmem>>, vector<32x8xbf16>
    %cst_36 = arith.constant dense<0.000000e+00> : vector<16x8xf32>
    %77 = tpu.matmul %40, %76, %cst_36 {dimension_numbers = #tpu.dot_dimension_numbers<[1], [0], [0], [1], [0, 0, 1, 1], [], []>} : vector<16x32xbf16>, vector<32x8xbf16>, vector<16x8xf32> -> vector<16x8xf32>
    %c96 = arith.constant 96 : index
    %c0_37 = arith.constant 0 : index
    %78 = vector.load %arg3[%c96, %c0_37] : memref<296x128xf32, #tpu.memory_space<vmem>>, vector<1x8xf32>
    %79 = vector.broadcast %78 : vector<1x8xf32> to vector<16x8xf32>
    %80 = arith.addf %77, %79 : vector<16x8xf32>
    %c304 = arith.constant 304 : index
    %c0_38 = arith.constant 0 : index
    %81 = vector.load %arg2[%c304, %c0_38] : memref<1808x128xbf16, #tpu.memory_space<vmem>>, vector<32x8xbf16>
    %cst_39 = arith.constant dense<0.000000e+00> : vector<16x8xf32>
    %82 = tpu.matmul %40, %81, %cst_39 {dimension_numbers = #tpu.dot_dimension_numbers<[1], [0], [0], [1], [0, 0, 1, 1], [], []>} : vector<16x32xbf16>, vector<32x8xbf16>, vector<16x8xf32> -> vector<16x8xf32>
    %c56 = arith.constant 56 : index
    %c0_40 = arith.constant 0 : index
    %83 = vector.load %arg3[%c56, %c0_40] : memref<296x128xf32, #tpu.memory_space<vmem>>, vector<1x8xf32>
    %84 = vector.broadcast %83 : vector<1x8xf32> to vector<16x8xf32>
    %85 = arith.addf %82, %84 : vector<16x8xf32>
    %c368 = arith.constant 368 : index
    %c0_41 = arith.constant 0 : index
    %86 = vector.load %arg2[%c368, %c0_41] : memref<1808x128xbf16, #tpu.memory_space<vmem>>, vector<32x8xbf16>
    %cst_42 = arith.constant dense<0.000000e+00> : vector<16x8xf32>
    %87 = tpu.matmul %40, %86, %cst_42 {dimension_numbers = #tpu.dot_dimension_numbers<[1], [0], [0], [1], [0, 0, 1, 1], [], []>} : vector<16x32xbf16>, vector<32x8xbf16>, vector<16x8xf32> -> vector<16x8xf32>
    %c72 = arith.constant 72 : index
    %c0_43 = arith.constant 0 : index
    %88 = vector.load %arg3[%c72, %c0_43] : memref<296x128xf32, #tpu.memory_space<vmem>>, vector<1x8xf32>
    %89 = vector.broadcast %88 : vector<1x8xf32> to vector<16x8xf32>
    %90 = arith.addf %87, %89 : vector<16x8xf32>
    %c432 = arith.constant 432 : index
    %c0_44 = arith.constant 0 : index
    %91 = vector.load %arg2[%c432, %c0_44] : memref<1808x128xbf16, #tpu.memory_space<vmem>>, vector<32x8xbf16>
    %cst_45 = arith.constant dense<0.000000e+00> : vector<16x8xf32>
    %92 = tpu.matmul %40, %91, %cst_45 {dimension_numbers = #tpu.dot_dimension_numbers<[1], [0], [0], [1], [0, 0, 1, 1], [], []>} : vector<16x32xbf16>, vector<32x8xbf16>, vector<16x8xf32> -> vector<16x8xf32>
    %c88 = arith.constant 88 : index
    %c0_46 = arith.constant 0 : index
    %93 = vector.load %arg3[%c88, %c0_46] : memref<296x128xf32, #tpu.memory_space<vmem>>, vector<1x8xf32>
    %94 = vector.broadcast %93 : vector<1x8xf32> to vector<16x8xf32>
    %95 = arith.addf %92, %94 : vector<16x8xf32>
    %c496 = arith.constant 496 : index
    %c0_47 = arith.constant 0 : index
    %96 = vector.load %arg2[%c496, %c0_47] : memref<1808x128xbf16, #tpu.memory_space<vmem>>, vector<32x8xbf16>
    %cst_48 = arith.constant dense<0.000000e+00> : vector<16x8xf32>
    %97 = tpu.matmul %40, %96, %cst_48 {dimension_numbers = #tpu.dot_dimension_numbers<[1], [0], [0], [1], [0, 0, 1, 1], [], []>} : vector<16x32xbf16>, vector<32x8xbf16>, vector<16x8xf32> -> vector<16x8xf32>
    %c104 = arith.constant 104 : index
    %c0_49 = arith.constant 0 : index
    %98 = vector.load %arg3[%c104, %c0_49] : memref<296x128xf32, #tpu.memory_space<vmem>>, vector<1x8xf32>
    %99 = vector.broadcast %98 : vector<1x8xf32> to vector<16x8xf32>
    %100 = arith.addf %97, %99 : vector<16x8xf32>
    %101 = arith.truncf %45 : vector<16x8xf32> to vector<16x8xbf16>
    %102 = arith.truncf %65 : vector<16x8xf32> to vector<16x8xbf16>
    %cst_50 = arith.constant dense<0.000000e+00> : vector<16x16xf32>
    %103 = tpu.matmul %101, %102, %cst_50 {dimension_numbers = #tpu.dot_dimension_numbers<[1], [1], [0], [0], [0, 0, 1, 0], [], []>} : vector<16x8xbf16>, vector<16x8xbf16>, vector<16x16xf32> -> vector<16x16xf32>
    %cst_51 = arith.constant 0.353553385 : f32
    %104 = vector.broadcast %cst_51 : f32 to vector<16x16xf32>
    %105 = arith.mulf %103, %104 : vector<16x16xf32>
    %106 = arith.addf %105, %26 : vector<16x16xf32>
    %107 = arith.truncf %50 : vector<16x8xf32> to vector<16x8xbf16>
    %108 = arith.truncf %70 : vector<16x8xf32> to vector<16x8xbf16>
    %cst_52 = arith.constant dense<0.000000e+00> : vector<16x16xf32>
    %109 = tpu.matmul %107, %108, %cst_52 {dimension_numbers = #tpu.dot_dimension_numbers<[1], [1], [0], [0], [0, 0, 1, 0], [], []>} : vector<16x8xbf16>, vector<16x8xbf16>, vector<16x16xf32> -> vector<16x16xf32>
    %cst_53 = arith.constant 0.353553385 : f32
    %110 = vector.broadcast %cst_53 : f32 to vector<16x16xf32>
    %111 = arith.mulf %109, %110 : vector<16x16xf32>
    %112 = arith.addf %111, %26 : vector<16x16xf32>
    %113 = arith.truncf %55 : vector<16x8xf32> to vector<16x8xbf16>
    %114 = arith.truncf %75 : vector<16x8xf32> to vector<16x8xbf16>
    %cst_54 = arith.constant dense<0.000000e+00> : vector<16x16xf32>
    %115 = tpu.matmul %113, %114, %cst_54 {dimension_numbers = #tpu.dot_dimension_numbers<[1], [1], [0], [0], [0, 0, 1, 0], [], []>} : vector<16x8xbf16>, vector<16x8xbf16>, vector<16x16xf32> -> vector<16x16xf32>
    %cst_55 = arith.constant 0.353553385 : f32
    %116 = vector.broadcast %cst_55 : f32 to vector<16x16xf32>
    %117 = arith.mulf %115, %116 : vector<16x16xf32>
    %118 = arith.addf %117, %26 : vector<16x16xf32>
    %119 = arith.truncf %60 : vector<16x8xf32> to vector<16x8xbf16>
    %120 = arith.truncf %80 : vector<16x8xf32> to vector<16x8xbf16>
    %cst_56 = arith.constant dense<0.000000e+00> : vector<16x16xf32>
    %121 = tpu.matmul %119, %120, %cst_56 {dimension_numbers = #tpu.dot_dimension_numbers<[1], [1], [0], [0], [0, 0, 1, 0], [], []>} : vector<16x8xbf16>, vector<16x8xbf16>, vector<16x16xf32> -> vector<16x16xf32>
    %cst_57 = arith.constant 0.353553385 : f32
    %122 = vector.broadcast %cst_57 : f32 to vector<16x16xf32>
    %123 = arith.mulf %121, %122 : vector<16x16xf32>
    %124 = arith.addf %123, %26 : vector<16x16xf32>
    %125 = tpu.concatenate %106, %112, %118, %124 in 0 : vector<16x16xf32>, vector<16x16xf32>, vector<16x16xf32>, vector<16x16xf32> -> vector<64x16xf32>
    %cst_58 = arith.constant dense<0xFF800000> : vector<64xf32>
    %126 = vector.multi_reduction <maximumf>, %125, %cst_58 [1] : vector<64x16xf32> to vector<64xf32>
    %127 = vector.shape_cast %126 : vector<64xf32> to vector<64x1xf32>
    %128 = vector.broadcast %127 : vector<64x1xf32> to vector<64x16xf32>
    %129 = arith.subf %125, %128 : vector<64x16xf32>
    %130 = math.exp %129 : vector<64x16xf32>
    %cst_59 = arith.constant dense<0.000000e+00> : vector<64xf32>
    %131 = vector.multi_reduction <add>, %130, %cst_59 [1] : vector<64x16xf32> to vector<64xf32>
    %132 = vector.shape_cast %131 : vector<64xf32> to vector<64x1xf32>
    %133 = tpu.reciprocal %132 {approx = true} : vector<64x1xf32> -> vector<64x1xf32>
    %134 = vector.broadcast %133 : vector<64x1xf32> to vector<64x16xf32>
    %135 = arith.mulf %130, %134 : vector<64x16xf32>
    %136 = arith.truncf %135 : vector<64x16xf32> to vector<64x16xbf16>
    %137 = vector.extract_strided_slice %136 {offsets = [0, 0], sizes = [16, 16], strides = [1, 1]} : vector<64x16xbf16> to vector<16x16xbf16>
    %138 = arith.truncf %85 : vector<16x8xf32> to vector<16x8xbf16>
    %cst_60 = arith.constant dense<0.000000e+00> : vector<16x8xf32>
    %139 = tpu.matmul %137, %138, %cst_60 {dimension_numbers = #tpu.dot_dimension_numbers<[1], [0], [0], [1], [0, 0, 1, 1], [], []>} : vector<16x16xbf16>, vector<16x8xbf16>, vector<16x8xf32> -> vector<16x8xf32>
    %140 = arith.truncf %139 : vector<16x8xf32> to vector<16x8xbf16>
    %c528 = arith.constant 528 : index
    %c0_61 = arith.constant 0 : index
    %141 = vector.load %arg2[%c528, %c0_61] : memref<1808x128xbf16, #tpu.memory_space<vmem>>, vector<8x32xbf16>
    %cst_62 = arith.constant dense<0.000000e+00> : vector<16x32xf32>
    %142 = tpu.matmul %140, %141, %cst_62 {dimension_numbers = #tpu.dot_dimension_numbers<[1], [0], [0], [1], [0, 0, 1, 1], [], []>} : vector<16x8xbf16>, vector<8x32xbf16>, vector<16x32xf32> -> vector<16x32xf32>
    %143 = vector.extract_strided_slice %136 {offsets = [16, 0], sizes = [16, 16], strides = [1, 1]} : vector<64x16xbf16> to vector<16x16xbf16>
    %144 = arith.truncf %90 : vector<16x8xf32> to vector<16x8xbf16>
    %cst_63 = arith.constant dense<0.000000e+00> : vector<16x8xf32>
    %145 = tpu.matmul %143, %144, %cst_63 {dimension_numbers = #tpu.dot_dimension_numbers<[1], [0], [0], [1], [0, 0, 1, 1], [], []>} : vector<16x16xbf16>, vector<16x8xbf16>, vector<16x8xf32> -> vector<16x8xf32>
    %146 = arith.truncf %145 : vector<16x8xf32> to vector<16x8xbf16>
    %c544 = arith.constant 544 : index
    %c0_64 = arith.constant 0 : index
    %147 = vector.load %arg2[%c544, %c0_64] : memref<1808x128xbf16, #tpu.memory_space<vmem>>, vector<8x32xbf16>
    %cst_65 = arith.constant dense<0.000000e+00> : vector<16x32xf32>
    %148 = tpu.matmul %146, %147, %cst_65 {dimension_numbers = #tpu.dot_dimension_numbers<[1], [0], [0], [1], [0, 0, 1, 1], [], []>} : vector<16x8xbf16>, vector<8x32xbf16>, vector<16x32xf32> -> vector<16x32xf32>
    %149 = arith.addf %142, %148 : vector<16x32xf32>
    %150 = vector.extract_strided_slice %136 {offsets = [32, 0], sizes = [16, 16], strides = [1, 1]} : vector<64x16xbf16> to vector<16x16xbf16>
    %151 = arith.truncf %95 : vector<16x8xf32> to vector<16x8xbf16>
    %cst_66 = arith.constant dense<0.000000e+00> : vector<16x8xf32>
    %152 = tpu.matmul %150, %151, %cst_66 {dimension_numbers = #tpu.dot_dimension_numbers<[1], [0], [0], [1], [0, 0, 1, 1], [], []>} : vector<16x16xbf16>, vector<16x8xbf16>, vector<16x8xf32> -> vector<16x8xf32>
    %153 = arith.truncf %152 : vector<16x8xf32> to vector<16x8xbf16>
    %c560 = arith.constant 560 : index
    %c0_67 = arith.constant 0 : index
    %154 = vector.load %arg2[%c560, %c0_67] : memref<1808x128xbf16, #tpu.memory_space<vmem>>, vector<8x32xbf16>
    %cst_68 = arith.constant dense<0.000000e+00> : vector<16x32xf32>
    %155 = tpu.matmul %153, %154, %cst_68 {dimension_numbers = #tpu.dot_dimension_numbers<[1], [0], [0], [1], [0, 0, 1, 1], [], []>} : vector<16x8xbf16>, vector<8x32xbf16>, vector<16x32xf32> -> vector<16x32xf32>
    %156 = arith.addf %149, %155 : vector<16x32xf32>
    %157 = vector.extract_strided_slice %136 {offsets = [48, 0], sizes = [16, 16], strides = [1, 1]} : vector<64x16xbf16> to vector<16x16xbf16>
    %158 = arith.truncf %100 : vector<16x8xf32> to vector<16x8xbf16>
    %cst_69 = arith.constant dense<0.000000e+00> : vector<16x8xf32>
    %159 = tpu.matmul %157, %158, %cst_69 {dimension_numbers = #tpu.dot_dimension_numbers<[1], [0], [0], [1], [0, 0, 1, 1], [], []>} : vector<16x16xbf16>, vector<16x8xbf16>, vector<16x8xf32> -> vector<16x8xf32>
    %160 = arith.truncf %159 : vector<16x8xf32> to vector<16x8xbf16>
    %c576 = arith.constant 576 : index
    %c0_70 = arith.constant 0 : index
    %161 = vector.load %arg2[%c576, %c0_70] : memref<1808x128xbf16, #tpu.memory_space<vmem>>, vector<8x32xbf16>
    %cst_71 = arith.constant dense<0.000000e+00> : vector<16x32xf32>
    %162 = tpu.matmul %160, %161, %cst_71 {dimension_numbers = #tpu.dot_dimension_numbers<[1], [0], [0], [1], [0, 0, 1, 1], [], []>} : vector<16x8xbf16>, vector<8x32xbf16>, vector<16x32xf32> -> vector<16x32xf32>
    %163 = arith.addf %156, %162 : vector<16x32xf32>
    %164 = arith.addf %14, %163 : vector<16x32xf32>
    %c112 = arith.constant 112 : index
    %c0_72 = arith.constant 0 : index
    %165 = vector.load %arg3[%c112, %c0_72] : memref<296x128xf32, #tpu.memory_space<vmem>>, vector<1x32xf32>
    %166 = vector.broadcast %165 : vector<1x32xf32> to vector<16x32xf32>
    %167 = arith.addf %164, %166 : vector<16x32xf32>
    %168 = arith.mulf %167, %167 : vector<16x32xf32>
    %cst_73 = arith.constant dense<0.000000e+00> : vector<16xf32>
    %169 = vector.multi_reduction <add>, %168, %cst_73 [1] : vector<16x32xf32> to vector<16xf32>
    %170 = vector.shape_cast %169 : vector<16xf32> to vector<16x1xf32>
    %cst_74 = arith.constant 3.200000e+01 : f32
    %171 = vector.broadcast %cst_74 : f32 to vector<16x1xf32>
    %172 = arith.divf %170, %171 : vector<16x1xf32>
    %cst_75 = arith.constant 9.99999997E-7 : f32
    %173 = vector.broadcast %cst_75 : f32 to vector<16x1xf32>
    %174 = arith.addf %172, %173 : vector<16x1xf32>
    %175 = math.rsqrt %174 : vector<16x1xf32>
    %176 = vector.broadcast %175 : vector<16x1xf32> to vector<16x32xf32>
    %177 = arith.mulf %167, %176 : vector<16x32xf32>
    %c120 = arith.constant 120 : index
    %c0_76 = arith.constant 0 : index
    %178 = vector.load %arg3[%c120, %c0_76] : memref<296x128xf32, #tpu.memory_space<vmem>>, vector<1x32xf32>
    %179 = vector.broadcast %178 : vector<1x32xf32> to vector<16x32xf32>
    %180 = arith.mulf %177, %179 : vector<16x32xf32>
    %181 = arith.truncf %180 : vector<16x32xf32> to vector<16x32xbf16>
    %c592 = arith.constant 592 : index
    %c0_77 = arith.constant 0 : index
    %182 = vector.load %arg2[%c592, %c0_77] : memref<1808x128xbf16, #tpu.memory_space<vmem>>, vector<32x128xbf16>
    %cst_78 = arith.constant dense<0.000000e+00> : vector<16x128xf32>
    %183 = tpu.matmul %181, %182, %cst_78 {dimension_numbers = #tpu.dot_dimension_numbers<[1], [0], [0], [1], [0, 0, 1, 1], [], []>} : vector<16x32xbf16>, vector<32x128xbf16>, vector<16x128xf32> -> vector<16x128xf32>
    %c128_79 = arith.constant 128 : index
    %c0_80 = arith.constant 0 : index
    %184 = vector.load %arg3[%c128_79, %c0_80] : memref<296x128xf32, #tpu.memory_space<vmem>>, vector<1x128xf32>
    %185 = vector.broadcast %184 : vector<1x128xf32> to vector<16x128xf32>
    %186 = arith.addf %183, %185 : vector<16x128xf32>
    %187 = arith.truncf %186 : vector<16x128xf32> to vector<16x128xbf16>
    %c624 = arith.constant 624 : index
    %c0_81 = arith.constant 0 : index
    %188 = vector.load %arg2[%c624, %c0_81] : memref<1808x128xbf16, #tpu.memory_space<vmem>>, vector<128x128xbf16>
    %cst_82 = arith.constant dense<0.000000e+00> : vector<16x128xf32>
    %189 = tpu.matmul %187, %188, %cst_82 {dimension_numbers = #tpu.dot_dimension_numbers<[1], [0], [0], [1], [0, 0, 1, 1], [], []>} : vector<16x128xbf16>, vector<128x128xbf16>, vector<16x128xf32> -> vector<16x128xf32>
    %c136 = arith.constant 136 : index
    %c0_83 = arith.constant 0 : index
    %190 = vector.load %arg3[%c136, %c0_83] : memref<296x128xf32, #tpu.memory_space<vmem>>, vector<1x128xf32>
    %191 = vector.broadcast %190 : vector<1x128xf32> to vector<16x128xf32>
    %192 = arith.addf %189, %191 : vector<16x128xf32>
    %193 = arith.truncf %186 : vector<16x128xf32> to vector<16x128xbf16>
    %c752 = arith.constant 752 : index
    %c0_84 = arith.constant 0 : index
    %194 = vector.load %arg2[%c752, %c0_84] : memref<1808x128xbf16, #tpu.memory_space<vmem>>, vector<128x128xbf16>
    %cst_85 = arith.constant dense<0.000000e+00> : vector<16x128xf32>
    %195 = tpu.matmul %193, %194, %cst_85 {dimension_numbers = #tpu.dot_dimension_numbers<[1], [0], [0], [1], [0, 0, 1, 1], [], []>} : vector<16x128xbf16>, vector<128x128xbf16>, vector<16x128xf32> -> vector<16x128xf32>
    %c144_86 = arith.constant 144 : index
    %c0_87 = arith.constant 0 : index
    %196 = vector.load %arg3[%c144_86, %c0_87] : memref<296x128xf32, #tpu.memory_space<vmem>>, vector<1x128xf32>
    %197 = vector.broadcast %196 : vector<1x128xf32> to vector<16x128xf32>
    %198 = arith.addf %195, %197 : vector<16x128xf32>
    %cst_88 = arith.constant 0.000000e+00 : f32
    %199 = vector.broadcast %cst_88 : f32 to vector<16x128xf32>
    %200 = arith.subf %199, %198 : vector<16x128xf32>
    %201 = math.exp %200 : vector<16x128xf32>
    %cst_89 = arith.constant 1.000000e+00 : f32
    %202 = vector.broadcast %cst_89 : f32 to vector<16x128xf32>
    %203 = arith.addf %202, %201 : vector<16x128xf32>
    %204 = arith.divf %198, %203 : vector<16x128xf32>
    %205 = arith.mulf %192, %204 : vector<16x128xf32>
    %206 = arith.truncf %205 : vector<16x128xf32> to vector<16x128xbf16>
    %c880 = arith.constant 880 : index
    %c0_90 = arith.constant 0 : index
    %207 = vector.load %arg2[%c880, %c0_90] : memref<1808x128xbf16, #tpu.memory_space<vmem>>, vector<128x32xbf16>
    %cst_91 = arith.constant dense<0.000000e+00> : vector<16x32xf32>
    %208 = tpu.matmul %206, %207, %cst_91 {dimension_numbers = #tpu.dot_dimension_numbers<[1], [0], [0], [1], [0, 0, 1, 1], [], []>} : vector<16x128xbf16>, vector<128x32xbf16>, vector<16x32xf32> -> vector<16x32xf32>
    %c152 = arith.constant 152 : index
    %c0_92 = arith.constant 0 : index
    %209 = vector.load %arg3[%c152, %c0_92] : memref<296x128xf32, #tpu.memory_space<vmem>>, vector<1x32xf32>
    %210 = vector.broadcast %209 : vector<1x32xf32> to vector<16x32xf32>
    %211 = arith.addf %208, %210 : vector<16x32xf32>
    %212 = arith.addf %167, %211 : vector<16x32xf32>
    %213 = arith.mulf %212, %212 : vector<16x32xf32>
    %cst_93 = arith.constant dense<0.000000e+00> : vector<16xf32>
    %214 = vector.multi_reduction <add>, %213, %cst_93 [1] : vector<16x32xf32> to vector<16xf32>
    %215 = vector.shape_cast %214 : vector<16xf32> to vector<16x1xf32>
    %cst_94 = arith.constant 3.200000e+01 : f32
    %216 = vector.broadcast %cst_94 : f32 to vector<16x1xf32>
    %217 = arith.divf %215, %216 : vector<16x1xf32>
    %cst_95 = arith.constant 9.99999997E-7 : f32
    %218 = vector.broadcast %cst_95 : f32 to vector<16x1xf32>
    %219 = arith.addf %217, %218 : vector<16x1xf32>
    %220 = math.rsqrt %219 : vector<16x1xf32>
    %221 = vector.broadcast %220 : vector<16x1xf32> to vector<16x32xf32>
    %222 = arith.mulf %212, %221 : vector<16x32xf32>
    %c160 = arith.constant 160 : index
    %c0_96 = arith.constant 0 : index
    %223 = vector.load %arg3[%c160, %c0_96] : memref<296x128xf32, #tpu.memory_space<vmem>>, vector<1x32xf32>
    %224 = vector.broadcast %223 : vector<1x32xf32> to vector<16x32xf32>
    %225 = arith.mulf %222, %224 : vector<16x32xf32>
    %226 = arith.truncf %225 : vector<16x32xf32> to vector<16x32xbf16>
    %c1008 = arith.constant 1008 : index
    %c0_97 = arith.constant 0 : index
    %227 = vector.load %arg2[%c1008, %c0_97] : memref<1808x128xbf16, #tpu.memory_space<vmem>>, vector<32x8xbf16>
    %cst_98 = arith.constant dense<0.000000e+00> : vector<16x8xf32>
    %228 = tpu.matmul %226, %227, %cst_98 {dimension_numbers = #tpu.dot_dimension_numbers<[1], [0], [0], [1], [0, 0, 1, 1], [], []>} : vector<16x32xbf16>, vector<32x8xbf16>, vector<16x8xf32> -> vector<16x8xf32>
    %c168 = arith.constant 168 : index
    %c0_99 = arith.constant 0 : index
    %229 = vector.load %arg3[%c168, %c0_99] : memref<296x128xf32, #tpu.memory_space<vmem>>, vector<1x8xf32>
    %230 = vector.broadcast %229 : vector<1x8xf32> to vector<16x8xf32>
    %231 = arith.addf %228, %230 : vector<16x8xf32>
    %c1040 = arith.constant 1040 : index
    %c0_100 = arith.constant 0 : index
    %232 = vector.load %arg2[%c1040, %c0_100] : memref<1808x128xbf16, #tpu.memory_space<vmem>>, vector<32x8xbf16>
    %cst_101 = arith.constant dense<0.000000e+00> : vector<16x8xf32>
    %233 = tpu.matmul %226, %232, %cst_101 {dimension_numbers = #tpu.dot_dimension_numbers<[1], [0], [0], [1], [0, 0, 1, 1], [], []>} : vector<16x32xbf16>, vector<32x8xbf16>, vector<16x8xf32> -> vector<16x8xf32>
    %c176_102 = arith.constant 176 : index
    %c0_103 = arith.constant 0 : index
    %234 = vector.load %arg3[%c176_102, %c0_103] : memref<296x128xf32, #tpu.memory_space<vmem>>, vector<1x8xf32>
    %235 = vector.broadcast %234 : vector<1x8xf32> to vector<16x8xf32>
    %236 = arith.addf %233, %235 : vector<16x8xf32>
    %c1072 = arith.constant 1072 : index
    %c0_104 = arith.constant 0 : index
    %237 = vector.load %arg2[%c1072, %c0_104] : memref<1808x128xbf16, #tpu.memory_space<vmem>>, vector<32x8xbf16>
    %cst_105 = arith.constant dense<0.000000e+00> : vector<16x8xf32>
    %238 = tpu.matmul %226, %237, %cst_105 {dimension_numbers = #tpu.dot_dimension_numbers<[1], [0], [0], [1], [0, 0, 1, 1], [], []>} : vector<16x32xbf16>, vector<32x8xbf16>, vector<16x8xf32> -> vector<16x8xf32>
    %c184 = arith.constant 184 : index
    %c0_106 = arith.constant 0 : index
    %239 = vector.load %arg3[%c184, %c0_106] : memref<296x128xf32, #tpu.memory_space<vmem>>, vector<1x8xf32>
    %240 = vector.broadcast %239 : vector<1x8xf32> to vector<16x8xf32>
    %241 = arith.addf %238, %240 : vector<16x8xf32>
    %c1104 = arith.constant 1104 : index
    %c0_107 = arith.constant 0 : index
    %242 = vector.load %arg2[%c1104, %c0_107] : memref<1808x128xbf16, #tpu.memory_space<vmem>>, vector<32x8xbf16>
    %cst_108 = arith.constant dense<0.000000e+00> : vector<16x8xf32>
    %243 = tpu.matmul %226, %242, %cst_108 {dimension_numbers = #tpu.dot_dimension_numbers<[1], [0], [0], [1], [0, 0, 1, 1], [], []>} : vector<16x32xbf16>, vector<32x8xbf16>, vector<16x8xf32> -> vector<16x8xf32>
    %c192 = arith.constant 192 : index
    %c0_109 = arith.constant 0 : index
    %244 = vector.load %arg3[%c192, %c0_109] : memref<296x128xf32, #tpu.memory_space<vmem>>, vector<1x8xf32>
    %245 = vector.broadcast %244 : vector<1x8xf32> to vector<16x8xf32>
    %246 = arith.addf %243, %245 : vector<16x8xf32>
    %c1136 = arith.constant 1136 : index
    %c0_110 = arith.constant 0 : index
    %247 = vector.load %arg2[%c1136, %c0_110] : memref<1808x128xbf16, #tpu.memory_space<vmem>>, vector<32x8xbf16>
    %cst_111 = arith.constant dense<0.000000e+00> : vector<16x8xf32>
    %248 = tpu.matmul %226, %247, %cst_111 {dimension_numbers = #tpu.dot_dimension_numbers<[1], [0], [0], [1], [0, 0, 1, 1], [], []>} : vector<16x32xbf16>, vector<32x8xbf16>, vector<16x8xf32> -> vector<16x8xf32>
    %c200 = arith.constant 200 : index
    %c0_112 = arith.constant 0 : index
    %249 = vector.load %arg3[%c200, %c0_112] : memref<296x128xf32, #tpu.memory_space<vmem>>, vector<1x8xf32>
    %250 = vector.broadcast %249 : vector<1x8xf32> to vector<16x8xf32>
    %251 = arith.addf %248, %250 : vector<16x8xf32>
    %c1200 = arith.constant 1200 : index
    %c0_113 = arith.constant 0 : index
    %252 = vector.load %arg2[%c1200, %c0_113] : memref<1808x128xbf16, #tpu.memory_space<vmem>>, vector<32x8xbf16>
    %cst_114 = arith.constant dense<0.000000e+00> : vector<16x8xf32>
    %253 = tpu.matmul %226, %252, %cst_114 {dimension_numbers = #tpu.dot_dimension_numbers<[1], [0], [0], [1], [0, 0, 1, 1], [], []>} : vector<16x32xbf16>, vector<32x8xbf16>, vector<16x8xf32> -> vector<16x8xf32>
    %c216 = arith.constant 216 : index
    %c0_115 = arith.constant 0 : index
    %254 = vector.load %arg3[%c216, %c0_115] : memref<296x128xf32, #tpu.memory_space<vmem>>, vector<1x8xf32>
    %255 = vector.broadcast %254 : vector<1x8xf32> to vector<16x8xf32>
    %256 = arith.addf %253, %255 : vector<16x8xf32>
    %c1264 = arith.constant 1264 : index
    %c0_116 = arith.constant 0 : index
    %257 = vector.load %arg2[%c1264, %c0_116] : memref<1808x128xbf16, #tpu.memory_space<vmem>>, vector<32x8xbf16>
    %cst_117 = arith.constant dense<0.000000e+00> : vector<16x8xf32>
    %258 = tpu.matmul %226, %257, %cst_117 {dimension_numbers = #tpu.dot_dimension_numbers<[1], [0], [0], [1], [0, 0, 1, 1], [], []>} : vector<16x32xbf16>, vector<32x8xbf16>, vector<16x8xf32> -> vector<16x8xf32>
    %c232 = arith.constant 232 : index
    %c0_118 = arith.constant 0 : index
    %259 = vector.load %arg3[%c232, %c0_118] : memref<296x128xf32, #tpu.memory_space<vmem>>, vector<1x8xf32>
    %260 = vector.broadcast %259 : vector<1x8xf32> to vector<16x8xf32>
    %261 = arith.addf %258, %260 : vector<16x8xf32>
    %c1168 = arith.constant 1168 : index
    %c0_119 = arith.constant 0 : index
    %262 = vector.load %arg2[%c1168, %c0_119] : memref<1808x128xbf16, #tpu.memory_space<vmem>>, vector<32x8xbf16>
    %cst_120 = arith.constant dense<0.000000e+00> : vector<16x8xf32>
    %263 = tpu.matmul %226, %262, %cst_120 {dimension_numbers = #tpu.dot_dimension_numbers<[1], [0], [0], [1], [0, 0, 1, 1], [], []>} : vector<16x32xbf16>, vector<32x8xbf16>, vector<16x8xf32> -> vector<16x8xf32>
    %c208_121 = arith.constant 208 : index
    %c0_122 = arith.constant 0 : index
    %264 = vector.load %arg3[%c208_121, %c0_122] : memref<296x128xf32, #tpu.memory_space<vmem>>, vector<1x8xf32>
    %265 = vector.broadcast %264 : vector<1x8xf32> to vector<16x8xf32>
    %266 = arith.addf %263, %265 : vector<16x8xf32>
    %c1232 = arith.constant 1232 : index
    %c0_123 = arith.constant 0 : index
    %267 = vector.load %arg2[%c1232, %c0_123] : memref<1808x128xbf16, #tpu.memory_space<vmem>>, vector<32x8xbf16>
    %cst_124 = arith.constant dense<0.000000e+00> : vector<16x8xf32>
    %268 = tpu.matmul %226, %267, %cst_124 {dimension_numbers = #tpu.dot_dimension_numbers<[1], [0], [0], [1], [0, 0, 1, 1], [], []>} : vector<16x32xbf16>, vector<32x8xbf16>, vector<16x8xf32> -> vector<16x8xf32>
    %c224 = arith.constant 224 : index
    %c0_125 = arith.constant 0 : index
    %269 = vector.load %arg3[%c224, %c0_125] : memref<296x128xf32, #tpu.memory_space<vmem>>, vector<1x8xf32>
    %270 = vector.broadcast %269 : vector<1x8xf32> to vector<16x8xf32>
    %271 = arith.addf %268, %270 : vector<16x8xf32>
    %c1296 = arith.constant 1296 : index
    %c0_126 = arith.constant 0 : index
    %272 = vector.load %arg2[%c1296, %c0_126] : memref<1808x128xbf16, #tpu.memory_space<vmem>>, vector<32x8xbf16>
    %cst_127 = arith.constant dense<0.000000e+00> : vector<16x8xf32>
    %273 = tpu.matmul %226, %272, %cst_127 {dimension_numbers = #tpu.dot_dimension_numbers<[1], [0], [0], [1], [0, 0, 1, 1], [], []>} : vector<16x32xbf16>, vector<32x8xbf16>, vector<16x8xf32> -> vector<16x8xf32>
    %c240_128 = arith.constant 240 : index
    %c0_129 = arith.constant 0 : index
    %274 = vector.load %arg3[%c240_128, %c0_129] : memref<296x128xf32, #tpu.memory_space<vmem>>, vector<1x8xf32>
    %275 = vector.broadcast %274 : vector<1x8xf32> to vector<16x8xf32>
    %276 = arith.addf %273, %275 : vector<16x8xf32>
    %277 = arith.truncf %231 : vector<16x8xf32> to vector<16x8xbf16>
    %278 = arith.truncf %251 : vector<16x8xf32> to vector<16x8xbf16>
    %cst_130 = arith.constant dense<0.000000e+00> : vector<16x16xf32>
    %279 = tpu.matmul %277, %278, %cst_130 {dimension_numbers = #tpu.dot_dimension_numbers<[1], [1], [0], [0], [0, 0, 1, 0], [], []>} : vector<16x8xbf16>, vector<16x8xbf16>, vector<16x16xf32> -> vector<16x16xf32>
    %cst_131 = arith.constant 0.353553385 : f32
    %280 = vector.broadcast %cst_131 : f32 to vector<16x16xf32>
    %281 = arith.mulf %279, %280 : vector<16x16xf32>
    %282 = arith.addf %281, %26 : vector<16x16xf32>
    %283 = arith.truncf %236 : vector<16x8xf32> to vector<16x8xbf16>
    %284 = arith.truncf %256 : vector<16x8xf32> to vector<16x8xbf16>
    %cst_132 = arith.constant dense<0.000000e+00> : vector<16x16xf32>
    %285 = tpu.matmul %283, %284, %cst_132 {dimension_numbers = #tpu.dot_dimension_numbers<[1], [1], [0], [0], [0, 0, 1, 0], [], []>} : vector<16x8xbf16>, vector<16x8xbf16>, vector<16x16xf32> -> vector<16x16xf32>
    %cst_133 = arith.constant 0.353553385 : f32
    %286 = vector.broadcast %cst_133 : f32 to vector<16x16xf32>
    %287 = arith.mulf %285, %286 : vector<16x16xf32>
    %288 = arith.addf %287, %26 : vector<16x16xf32>
    %289 = arith.truncf %241 : vector<16x8xf32> to vector<16x8xbf16>
    %290 = arith.truncf %261 : vector<16x8xf32> to vector<16x8xbf16>
    %cst_134 = arith.constant dense<0.000000e+00> : vector<16x16xf32>
    %291 = tpu.matmul %289, %290, %cst_134 {dimension_numbers = #tpu.dot_dimension_numbers<[1], [1], [0], [0], [0, 0, 1, 0], [], []>} : vector<16x8xbf16>, vector<16x8xbf16>, vector<16x16xf32> -> vector<16x16xf32>
    %cst_135 = arith.constant 0.353553385 : f32
    %292 = vector.broadcast %cst_135 : f32 to vector<16x16xf32>
    %293 = arith.mulf %291, %292 : vector<16x16xf32>
    %294 = arith.addf %293, %26 : vector<16x16xf32>
    %295 = arith.truncf %246 : vector<16x8xf32> to vector<16x8xbf16>
    %296 = arith.truncf %80 : vector<16x8xf32> to vector<16x8xbf16>
    %cst_136 = arith.constant dense<0.000000e+00> : vector<16x16xf32>
    %297 = tpu.matmul %295, %296, %cst_136 {dimension_numbers = #tpu.dot_dimension_numbers<[1], [1], [0], [0], [0, 0, 1, 0], [], []>} : vector<16x8xbf16>, vector<16x8xbf16>, vector<16x16xf32> -> vector<16x16xf32>
    %cst_137 = arith.constant 0.353553385 : f32
    %298 = vector.broadcast %cst_137 : f32 to vector<16x16xf32>
    %299 = arith.mulf %297, %298 : vector<16x16xf32>
    %300 = arith.addf %299, %26 : vector<16x16xf32>
    %301 = tpu.concatenate %282, %288, %294, %300 in 0 : vector<16x16xf32>, vector<16x16xf32>, vector<16x16xf32>, vector<16x16xf32> -> vector<64x16xf32>
    %cst_138 = arith.constant dense<0xFF800000> : vector<64xf32>
    %302 = vector.multi_reduction <maximumf>, %301, %cst_138 [1] : vector<64x16xf32> to vector<64xf32>
    %303 = vector.shape_cast %302 : vector<64xf32> to vector<64x1xf32>
    %304 = vector.broadcast %303 : vector<64x1xf32> to vector<64x16xf32>
    %305 = arith.subf %301, %304 : vector<64x16xf32>
    %306 = math.exp %305 : vector<64x16xf32>
    %cst_139 = arith.constant dense<0.000000e+00> : vector<64xf32>
    %307 = vector.multi_reduction <add>, %306, %cst_139 [1] : vector<64x16xf32> to vector<64xf32>
    %308 = vector.shape_cast %307 : vector<64xf32> to vector<64x1xf32>
    %309 = tpu.reciprocal %308 {approx = true} : vector<64x1xf32> -> vector<64x1xf32>
    %310 = vector.broadcast %309 : vector<64x1xf32> to vector<64x16xf32>
    %311 = arith.mulf %306, %310 : vector<64x16xf32>
    %312 = arith.truncf %311 : vector<64x16xf32> to vector<64x16xbf16>
    %313 = vector.extract_strided_slice %312 {offsets = [0, 0], sizes = [16, 16], strides = [1, 1]} : vector<64x16xbf16> to vector<16x16xbf16>
    %314 = arith.truncf %266 : vector<16x8xf32> to vector<16x8xbf16>
    %cst_140 = arith.constant dense<0.000000e+00> : vector<16x8xf32>
    %315 = tpu.matmul %313, %314, %cst_140 {dimension_numbers = #tpu.dot_dimension_numbers<[1], [0], [0], [1], [0, 0, 1, 1], [], []>} : vector<16x16xbf16>, vector<16x8xbf16>, vector<16x8xf32> -> vector<16x8xf32>
    %316 = arith.truncf %315 : vector<16x8xf32> to vector<16x8xbf16>
    %c1328 = arith.constant 1328 : index
    %c0_141 = arith.constant 0 : index
    %317 = vector.load %arg2[%c1328, %c0_141] : memref<1808x128xbf16, #tpu.memory_space<vmem>>, vector<8x32xbf16>
    %cst_142 = arith.constant dense<0.000000e+00> : vector<16x32xf32>
    %318 = tpu.matmul %316, %317, %cst_142 {dimension_numbers = #tpu.dot_dimension_numbers<[1], [0], [0], [1], [0, 0, 1, 1], [], []>} : vector<16x8xbf16>, vector<8x32xbf16>, vector<16x32xf32> -> vector<16x32xf32>
    %319 = vector.extract_strided_slice %312 {offsets = [16, 0], sizes = [16, 16], strides = [1, 1]} : vector<64x16xbf16> to vector<16x16xbf16>
    %320 = arith.truncf %271 : vector<16x8xf32> to vector<16x8xbf16>
    %cst_143 = arith.constant dense<0.000000e+00> : vector<16x8xf32>
    %321 = tpu.matmul %319, %320, %cst_143 {dimension_numbers = #tpu.dot_dimension_numbers<[1], [0], [0], [1], [0, 0, 1, 1], [], []>} : vector<16x16xbf16>, vector<16x8xbf16>, vector<16x8xf32> -> vector<16x8xf32>
    %322 = arith.truncf %321 : vector<16x8xf32> to vector<16x8xbf16>
    %c1344 = arith.constant 1344 : index
    %c0_144 = arith.constant 0 : index
    %323 = vector.load %arg2[%c1344, %c0_144] : memref<1808x128xbf16, #tpu.memory_space<vmem>>, vector<8x32xbf16>
    %cst_145 = arith.constant dense<0.000000e+00> : vector<16x32xf32>
    %324 = tpu.matmul %322, %323, %cst_145 {dimension_numbers = #tpu.dot_dimension_numbers<[1], [0], [0], [1], [0, 0, 1, 1], [], []>} : vector<16x8xbf16>, vector<8x32xbf16>, vector<16x32xf32> -> vector<16x32xf32>
    %325 = arith.addf %318, %324 : vector<16x32xf32>
    %326 = vector.extract_strided_slice %312 {offsets = [32, 0], sizes = [16, 16], strides = [1, 1]} : vector<64x16xbf16> to vector<16x16xbf16>
    %327 = arith.truncf %276 : vector<16x8xf32> to vector<16x8xbf16>
    %cst_146 = arith.constant dense<0.000000e+00> : vector<16x8xf32>
    %328 = tpu.matmul %326, %327, %cst_146 {dimension_numbers = #tpu.dot_dimension_numbers<[1], [0], [0], [1], [0, 0, 1, 1], [], []>} : vector<16x16xbf16>, vector<16x8xbf16>, vector<16x8xf32> -> vector<16x8xf32>
    %329 = arith.truncf %328 : vector<16x8xf32> to vector<16x8xbf16>
    %c1360 = arith.constant 1360 : index
    %c0_147 = arith.constant 0 : index
    %330 = vector.load %arg2[%c1360, %c0_147] : memref<1808x128xbf16, #tpu.memory_space<vmem>>, vector<8x32xbf16>
    %cst_148 = arith.constant dense<0.000000e+00> : vector<16x32xf32>
    %331 = tpu.matmul %329, %330, %cst_148 {dimension_numbers = #tpu.dot_dimension_numbers<[1], [0], [0], [1], [0, 0, 1, 1], [], []>} : vector<16x8xbf16>, vector<8x32xbf16>, vector<16x32xf32> -> vector<16x32xf32>
    %332 = arith.addf %325, %331 : vector<16x32xf32>
    %333 = vector.extract_strided_slice %312 {offsets = [48, 0], sizes = [16, 16], strides = [1, 1]} : vector<64x16xbf16> to vector<16x16xbf16>
    %334 = arith.truncf %100 : vector<16x8xf32> to vector<16x8xbf16>
    %cst_149 = arith.constant dense<0.000000e+00> : vector<16x8xf32>
    %335 = tpu.matmul %333, %334, %cst_149 {dimension_numbers = #tpu.dot_dimension_numbers<[1], [0], [0], [1], [0, 0, 1, 1], [], []>} : vector<16x16xbf16>, vector<16x8xbf16>, vector<16x8xf32> -> vector<16x8xf32>
    %336 = arith.truncf %335 : vector<16x8xf32> to vector<16x8xbf16>
    %c1376 = arith.constant 1376 : index
    %c0_150 = arith.constant 0 : index
    %337 = vector.load %arg2[%c1376, %c0_150] : memref<1808x128xbf16, #tpu.memory_space<vmem>>, vector<8x32xbf16>
    %cst_151 = arith.constant dense<0.000000e+00> : vector<16x32xf32>
    %338 = tpu.matmul %336, %337, %cst_151 {dimension_numbers = #tpu.dot_dimension_numbers<[1], [0], [0], [1], [0, 0, 1, 1], [], []>} : vector<16x8xbf16>, vector<8x32xbf16>, vector<16x32xf32> -> vector<16x32xf32>
    %339 = arith.addf %332, %338 : vector<16x32xf32>
    %340 = arith.addf %212, %339 : vector<16x32xf32>
    %c248 = arith.constant 248 : index
    %c0_152 = arith.constant 0 : index
    %341 = vector.load %arg3[%c248, %c0_152] : memref<296x128xf32, #tpu.memory_space<vmem>>, vector<1x32xf32>
    %342 = vector.broadcast %341 : vector<1x32xf32> to vector<16x32xf32>
    %343 = arith.addf %340, %342 : vector<16x32xf32>
    %344 = arith.mulf %343, %343 : vector<16x32xf32>
    %cst_153 = arith.constant dense<0.000000e+00> : vector<16xf32>
    %345 = vector.multi_reduction <add>, %344, %cst_153 [1] : vector<16x32xf32> to vector<16xf32>
    %346 = vector.shape_cast %345 : vector<16xf32> to vector<16x1xf32>
    %cst_154 = arith.constant 3.200000e+01 : f32
    %347 = vector.broadcast %cst_154 : f32 to vector<16x1xf32>
    %348 = arith.divf %346, %347 : vector<16x1xf32>
    %cst_155 = arith.constant 9.99999997E-7 : f32
    %349 = vector.broadcast %cst_155 : f32 to vector<16x1xf32>
    %350 = arith.addf %348, %349 : vector<16x1xf32>
    %351 = math.rsqrt %350 : vector<16x1xf32>
    %352 = vector.broadcast %351 : vector<16x1xf32> to vector<16x32xf32>
    %353 = arith.mulf %343, %352 : vector<16x32xf32>
    %c256 = arith.constant 256 : index
    %c0_156 = arith.constant 0 : index
    %354 = vector.load %arg3[%c256, %c0_156] : memref<296x128xf32, #tpu.memory_space<vmem>>, vector<1x32xf32>
    %355 = vector.broadcast %354 : vector<1x32xf32> to vector<16x32xf32>
    %356 = arith.mulf %353, %355 : vector<16x32xf32>
    %357 = arith.truncf %356 : vector<16x32xf32> to vector<16x32xbf16>
    %c1392 = arith.constant 1392 : index
    %c0_157 = arith.constant 0 : index
    %358 = vector.load %arg2[%c1392, %c0_157] : memref<1808x128xbf16, #tpu.memory_space<vmem>>, vector<32x128xbf16>
    %cst_158 = arith.constant dense<0.000000e+00> : vector<16x128xf32>
    %359 = tpu.matmul %357, %358, %cst_158 {dimension_numbers = #tpu.dot_dimension_numbers<[1], [0], [0], [1], [0, 0, 1, 1], [], []>} : vector<16x32xbf16>, vector<32x128xbf16>, vector<16x128xf32> -> vector<16x128xf32>
    %c264 = arith.constant 264 : index
    %c0_159 = arith.constant 0 : index
    %360 = vector.load %arg3[%c264, %c0_159] : memref<296x128xf32, #tpu.memory_space<vmem>>, vector<1x128xf32>
    %361 = vector.broadcast %360 : vector<1x128xf32> to vector<16x128xf32>
    %362 = arith.addf %359, %361 : vector<16x128xf32>
    %363 = arith.truncf %362 : vector<16x128xf32> to vector<16x128xbf16>
    %c1424 = arith.constant 1424 : index
    %c0_160 = arith.constant 0 : index
    %364 = vector.load %arg2[%c1424, %c0_160] : memref<1808x128xbf16, #tpu.memory_space<vmem>>, vector<128x128xbf16>
    %cst_161 = arith.constant dense<0.000000e+00> : vector<16x128xf32>
    %365 = tpu.matmul %363, %364, %cst_161 {dimension_numbers = #tpu.dot_dimension_numbers<[1], [0], [0], [1], [0, 0, 1, 1], [], []>} : vector<16x128xbf16>, vector<128x128xbf16>, vector<16x128xf32> -> vector<16x128xf32>
    %c272_162 = arith.constant 272 : index
    %c0_163 = arith.constant 0 : index
    %366 = vector.load %arg3[%c272_162, %c0_163] : memref<296x128xf32, #tpu.memory_space<vmem>>, vector<1x128xf32>
    %367 = vector.broadcast %366 : vector<1x128xf32> to vector<16x128xf32>
    %368 = arith.addf %365, %367 : vector<16x128xf32>
    %369 = arith.truncf %362 : vector<16x128xf32> to vector<16x128xbf16>
    %c1552 = arith.constant 1552 : index
    %c0_164 = arith.constant 0 : index
    %370 = vector.load %arg2[%c1552, %c0_164] : memref<1808x128xbf16, #tpu.memory_space<vmem>>, vector<128x128xbf16>
    %cst_165 = arith.constant dense<0.000000e+00> : vector<16x128xf32>
    %371 = tpu.matmul %369, %370, %cst_165 {dimension_numbers = #tpu.dot_dimension_numbers<[1], [0], [0], [1], [0, 0, 1, 1], [], []>} : vector<16x128xbf16>, vector<128x128xbf16>, vector<16x128xf32> -> vector<16x128xf32>
    %c280 = arith.constant 280 : index
    %c0_166 = arith.constant 0 : index
    %372 = vector.load %arg3[%c280, %c0_166] : memref<296x128xf32, #tpu.memory_space<vmem>>, vector<1x128xf32>
    %373 = vector.broadcast %372 : vector<1x128xf32> to vector<16x128xf32>
    %374 = arith.addf %371, %373 : vector<16x128xf32>
    %cst_167 = arith.constant 0.000000e+00 : f32
    %375 = vector.broadcast %cst_167 : f32 to vector<16x128xf32>
    %376 = arith.subf %375, %374 : vector<16x128xf32>
    %377 = math.exp %376 : vector<16x128xf32>
    %cst_168 = arith.constant 1.000000e+00 : f32
    %378 = vector.broadcast %cst_168 : f32 to vector<16x128xf32>
    %379 = arith.addf %378, %377 : vector<16x128xf32>
    %380 = arith.divf %374, %379 : vector<16x128xf32>
    %381 = arith.mulf %368, %380 : vector<16x128xf32>
    %382 = arith.truncf %381 : vector<16x128xf32> to vector<16x128xbf16>
    %c1680 = arith.constant 1680 : index
    %c0_169 = arith.constant 0 : index
    %383 = vector.load %arg2[%c1680, %c0_169] : memref<1808x128xbf16, #tpu.memory_space<vmem>>, vector<128x32xbf16>
    %cst_170 = arith.constant dense<0.000000e+00> : vector<16x32xf32>
    %384 = tpu.matmul %382, %383, %cst_170 {dimension_numbers = #tpu.dot_dimension_numbers<[1], [0], [0], [1], [0, 0, 1, 1], [], []>} : vector<16x128xbf16>, vector<128x32xbf16>, vector<16x32xf32> -> vector<16x32xf32>
    %c288 = arith.constant 288 : index
    %c0_171 = arith.constant 0 : index
    %385 = vector.load %arg3[%c288, %c0_171] : memref<296x128xf32, #tpu.memory_space<vmem>>, vector<1x32xf32>
    %386 = vector.broadcast %385 : vector<1x32xf32> to vector<16x32xf32>
    %387 = arith.addf %384, %386 : vector<16x32xf32>
    %388 = arith.addf %343, %387 : vector<16x32xf32>
    %389 = vector.extract_strided_slice %388 {offsets = [7, 0], sizes = [1, 32], strides = [1, 1]} : vector<16x32xf32> to vector<1x32xf32>
    %390 = vector.extract_strided_slice %388 {offsets = [15, 0], sizes = [1, 32], strides = [1, 1]} : vector<16x32xf32> to vector<1x32xf32>
    %391 = tpu.concatenate %389, %390 in 0 : vector<1x32xf32>, vector<1x32xf32> -> vector<2x32xf32>
    %392 = arith.mulf %391, %391 : vector<2x32xf32>
    %cst_172 = arith.constant dense<0.000000e+00> : vector<2xf32>
    %393 = vector.multi_reduction <add>, %392, %cst_172 [1] : vector<2x32xf32> to vector<2xf32>
    %394 = vector.shape_cast %393 : vector<2xf32> to vector<2x1xf32>
    %cst_173 = arith.constant 3.200000e+01 : f32
    %395 = vector.broadcast %cst_173 : f32 to vector<2x1xf32>
    %396 = arith.divf %394, %395 : vector<2x1xf32>
    %cst_174 = arith.constant 9.99999997E-7 : f32
    %397 = vector.broadcast %cst_174 : f32 to vector<2x1xf32>
    %398 = arith.addf %396, %397 : vector<2x1xf32>
    %399 = math.rsqrt %398 : vector<2x1xf32>
    %400 = vector.broadcast %399 : vector<2x1xf32> to vector<2x32xf32>
    %401 = arith.mulf %391, %400 : vector<2x32xf32>
    %c0_175 = arith.constant 0 : index
    %c0_176 = arith.constant 0 : index
    %402 = vector.load %arg3[%c0_175, %c0_176] : memref<296x128xf32, #tpu.memory_space<vmem>>, vector<1x32xf32>
    %403 = vector.broadcast %402 : vector<1x32xf32> to vector<2x32xf32>
    %404 = arith.mulf %401, %403 : vector<2x32xf32>
    %405 = arith.truncf %404 : vector<2x32xf32> to vector<2x32xbf16>
    %c0_177 = arith.constant 0 : index
    %c0_178 = arith.constant 0 : index
    %406 = vector.load %arg2[%c0_177, %c0_178] : memref<1808x128xbf16, #tpu.memory_space<vmem>>, vector<128x32xbf16>
    %cst_179 = arith.constant dense<0.000000e+00> : vector<2x128xf32>
    %407 = tpu.matmul %405, %406, %cst_179 {dimension_numbers = #tpu.dot_dimension_numbers<[1], [1], [0], [0], [0, 0, 1, 0], [], []>} : vector<2x32xbf16>, vector<128x32xbf16>, vector<2x128xf32> -> vector<2x128xf32>
    %408 = vector.shape_cast %407 : vector<2x128xf32> to vector<1x2x128xf32>
    %c0_180 = arith.constant 0 : index
    %c0_181 = arith.constant 0 : index
    %c0_182 = arith.constant 0 : index
    %409 = vector.load %arg4[%c0_180, %c0_181, %c0_182] : memref<1x2x128xf32, #tpu.memory_space<vmem>>, vector<1x2x128xf32>
    tpu.vector_store %arg4[%c0_180, %c0_181, %c0_182], %408 {strides = array<i32>} : memref<1x2x128xf32, #tpu.memory_space<vmem>>, vector<1x2x128xf32>,
    return
  }
  func.func @transform_0(%arg0: i32) -> (i32, i32, i32) {
    %c0_i32 = arith.constant 0 : i32
    %c0_i32_0 = arith.constant 0 : i32
    %c0_i32_1 = arith.constant 0 : i32
    return %arg0, %c0_i32, %c0_i32_0 : i32, i32, i32
  }
  func.func @transform_1(%arg0: i32) -> (i32, i32) {
    %c0_i32 = arith.constant 0 : i32
    %c0_i32_0 = arith.constant 0 : i32
    %c0_i32_1 = arith.constant 0 : i32
    return %c0_i32, %c0_i32_0 : i32, i32
  }
  func.func @transform_2(%arg0: i32) -> (i32, i32) {
    %c0_i32 = arith.constant 0 : i32
    %c0_i32_0 = arith.constant 0 : i32
    %c0_i32_1 = arith.constant 0 : i32
    return %c0_i32, %c0_i32_0 : i32, i32
  }
  func.func @transform_3(%arg0: i32) -> (i32, i32, i32) {
    %c0_i32 = arith.constant 0 : i32
    %c0_i32_0 = arith.constant 0 : i32
    %c0_i32_1 = arith.constant 0 : i32
    return %arg0, %c0_i32, %c0_i32_0 : i32, i32, i32
  }
}

</mosaic_0001>

<bundles_post_ra>
// kernel: gpt_forward.1
= control target key start
LH: loop header
LB: loop body
LE: loop exit
PB: predicated region body
PF: predicated region fallthrough
CT: control target
= control target key end

     0   :  { %8 = vsyncpa [#allocation3], 0  ;;  %s3619_s0 = inlined_call_operand.vmem [shape: s32[1,16,1], index: 0, kind: input, shape index: {}]   ;;  %s3620_s1 = inlined_call_operand.hbm [shape: bf16[1808,128], index: 1, kind: input, shape index: {}]   ;;  %s3621_s2 = inlined_call_operand.hbm [shape: f32[296,128], index: 2, kind: input, shape index: {}]   ;;  %s3622_s3 = inlined_call_operand.hbm [shape: f32[1,2,128], index: 3, kind: output, shape index: {}]  }
   0x1   :  { %9 = vsyncpa [#allocation6], 0 }
   0x2   :  { %10 = vsyncpa [#allocation4], 0  ;;  %s17_s14 = sshll.u32 %s3620_s1, 4  ;;  %s3342_s15 = smov [#allocation2]   ;;  %s18_s14 = int_to_ptr.hbm [resolvable:$true] %s17_s14 }
   0x3   :  { %s19_s16 = sshll.u32 %s3342_s15, 4  ;;  %s30_s19 = sshll.u32 %s3621_s2, 4  ;;  %s20_s16 = int_to_ptr.vmem [resolvable:$true] %s19_s16  ;;  %s31_s19 = int_to_ptr.hbm [resolvable:$true] %s30_s19 }
   0x4   :  { %s3343_s20 = smov 64   ;;  %s3344_s21 = smov 4  }
   0x5   :  { %25 = dma.hbm_to_vmem [thread:$0]  %s18_s14, 14464, %s20_s16, [#allocation3], %s3343_s20, %s3343_s20, %s3344_s21  }
   0x6   :  { %s3345_s22 = smov [#allocation5]   ;;  %s3346_s24 = smov 128  }
   0x7   :  { %s32_s23 = sshll.u32 %s3345_s22, 4  ;;  %s3347_s25 = smov 8   ;;  %s33_s23 = int_to_ptr.vmem [resolvable:$true] %s32_s23 }
   0x8   :  { %38 = dma.hbm_to_vmem [thread:$0]  %s31_s19, 4736, %s33_s23, [#allocation6], %s3346_s24, %s3346_s24, %s3347_s25  }
   0x9   :  { %3336 = dma.done.wait [#allocation3], 14464  }
   0xa   :  { %3337 = vsyncadd [#allocation3], 4294952832 }
   0xb   :  { %3338 = dma.done.wait [#allocation6], 4736  }
   0xc   :  { %3339 = vsyncadd [#allocation6], 4294962560  ;;  %v3348_v0 = vmov 0   ;;  %v48_v1 = vld [vmem:[%s3619_s0] sm:$0xff]  ;;  %v3010_v2 = vld [vmem:[#allocation2 + $0x38] sm:$0xff]  ;;  %v50_v12 = vlaneseq  ;;  %vm159_vm3 = vcmask 261120  }
   0xd   :  { %3118 = vset.pattern.permute.xlu0 %v3348_v0  ;;  %129 = vmatpush.bf16.msra.mxu0 %v3010_v2  ;;  %v3009_v3 = vld [vmem:[#allocation2 + $0x30] sm:$0xff]  ;;  %v49_v4 = vld [vmem:[%s3619_s0 + $0x8] sm:$0xff]  ;;  %v3007_v6 = vld [vmem:[#allocation2 + $0x20] sm:$0xff]  ;;  %v3349_v15 = vmov 1.0|1.0   ;;  %v3350_v26 = vmov 32.0  }
   0xe   :  { %53 = vperm.xlu0 %3118, %v48_v1   ;;  %v3008_v5 = vld [vmem:[#allocation2 + $0x28] sm:$0xff]  ;;  %v3006_v7 = vld [vmem:[#allocation2 + $0x18] sm:$0xff]  ;;  %v3005_v8 = vld [vmem:[#allocation2 + $0x10] sm:$0xff]  ;;  %v3386_v13 = vand.u32 127, %v50_v12  ;;  %3156 = vrcp.f32 %v3350_v26  ;;  %vm593_vm11 = vcmask 64512   ;;  %vm846_vm12 = vcmask 1043456  }
   0xf   :  { %v3004_v9 = vld [vmem:[#allocation2 + $0x8] sm:$0xff]  ;;  %v3003_v10 = vld [vmem:[#allocation2] sm:$0xff]  ;;  %v3012_v32 = vld [vmem:[#allocation2 + $0x50] sm:$0xff]  ;;  %s3352_s0 = smov [#allocation7]   ;;  %s2525_s4 = sshll.u32 %s3622_s3, 4  ;;  %s2526_s4 = int_to_ptr.hbm [resolvable:$true] %s2525_s4 }
  0x10   :  { %v79_v16 = vld [vmem:[#allocation2 + $0x40] sm:$0xf]  ;;  %v3016_v34 = vld [vmem:[#allocation2 + $0x70] sm:$0xff]  ;;  %231 = vmatpush.bf16.msra.mxu1 %v3012_v32  ;;  %v3011_v37 = vld [vmem:[#allocation2 + $0x48] sm:$0xff]  ;;  %s2523_s28 = sshll.u32 %s3352_s0, 4  ;;  %s2524_s28 = int_to_ptr.vmem [resolvable:$true] %s2523_s28 }
  0x11   :  { %130 = vmatpush.bf16.msra.mxu0 %v3009_v3  ;;  %v80_v17 = vunpack.c.l.bf16 %v79_v16  ;;  %v3014_v33 = vld [vmem:[#allocation2 + $0x60] sm:$0xff]  ;;  %295 = vmatpush.bf16.msra.mxu3 %v3016_v34  ;;  %v3013_v38 = vld [vmem:[#allocation2 + $0x58] sm:$0xff]  ;;  %v3015_v39 = vld [vmem:[#allocation2 + $0x68] sm:$0xff] }
  0x12   :  { %263 = vmatpush.bf16.msra.mxu2 %v3014_v33  ;;  %v3018_v42 = vld [vmem:[#allocation2 + $0x80] sm:$0xff]  ;;  %v3020_v43 = vld [vmem:[#allocation2 + $0x90] sm:$0xff]  ;;  %v3017_v46 = vld [vmem:[#allocation2 + $0x78] sm:$0xff] }
  0x13   :  { %v3022_v44 = vld [vmem:[#allocation2 + $0xb0] sm:$0xff]  ;;  %v3019_v47 = vld [vmem:[#allocation2 + $0x88] sm:$0xff]  ;;  %v3034_v16 = vld [vmem:[#allocation2 + $0x100] sm:$0xff] }
  0x14   :  { %v3157_v27 = vpop.eup %3156  ;;  %232 = vmatpush.bf16.msra.mxu1 %v3011_v37  ;;  %v3021_v49 = vld [vmem:[#allocation2 + $0xa8] sm:$0xff]  ;;  %v3119_v0 = vld [vmem:[#allocation5 + $0x8] ss:$0 sm:$0xff]  ;;  %v3124_v33 = vld [vmem:[#allocation5 + $0x30] ss:$0 sm:$0xff] }
  0x15   :  { %131 = vmatpush.bf16.msra.mxu0 %v3008_v5  ;;  %v167_v28 = vmul.f32 32.0, %v3157_v27  ;;  %vm171_vm4 = vweird.f32 %v3157_v27  ;;  %296 = vmatpush.bf16.msra.mxu3 %v3015_v39  ;;  %v3125_v34 = vld [vmem:[#allocation5 + $0x40] ss:$0 sm:$0xff] }
  0x16   :  { %56 = vperm.xlu0 %3118, %v49_v4   ;;  %264 = vmatpush.bf16.msra.mxu2 %v3013_v38 }
  0x17   :  { %v168_v29 = vsub.f32 1.0, %v167_v28 }
  0x18   :  { %327 = vmatpush.bf16.msrb.mxu1 %v3018_v42 }
  0x19   :  { %132 = vmatpush.bf16.msra.mxu0 %v3007_v6  ;;  %v169_v30 = vmul.f32 %v3157_v27, %v168_v29  ;;  %391 = vmatpush.bf16.msrb.mxu3 %v3022_v44  ;;  %v3024_v6 = vld [vmem:[#allocation2 + $0xd0] sm:$0xff] }
  0x1a   :  { %359 = vmatpush.bf16.msrb.mxu2 %v3020_v43 }
  0x1b   :  { %v170_v31 = vadd.f32 %v3157_v27, %v169_v30 }
  0x1c   :  { %328 = vmatpush.bf16.msrb.mxu1 %v3017_v46 }
  0x1d   :  { %133 = vmatpush.bf16.msra.mxu0 %v3006_v7  ;;  %v3400_v35 = vsel %vm171_vm4, %v3157_v27, %v170_v31  ;;  %392 = vmatpush.bf16.msrb.mxu3 %v3021_v49 }
  0x1e   :  { %360 = vmatpush.bf16.msrb.mxu2 %v3019_v47  ;;  %v3121_v47 = vld [vmem:[#allocation5 + $0x18] ss:$0 sm:$0xff] }
  0x21   :  { %134 = vmatpush.bf16.msra.mxu0 %v3005_v8  ;;  %v3026_v8 = vld [vmem:[#allocation2 + $0xf0] sm:$0xff] }
  0x25   :  { %135 = vmatpush.bf16.msra.mxu0 %v3004_v9  ;;  %v3028_v9 = vld [vmem:[#allocation2 + $0xa0] sm:$0xff] }
  0x29   :  { %136 = vmatpush.bf16.msra.mxu0 %v3003_v10  ;;  %v3023_v10 = vld [vmem:[#allocation2 + $0xc8] sm:$0xff] }
  0x80   :  { %v54_v11 = vpop.permute.xlu0 %53 }
  0x81   :  { %vm58_vm0 = vcmp.eq.s32.totalorder %v3386_v13, %v54_v11  ;;  %v3025_v11 = vld [vmem:[#allocation2 + $0xe8] sm:$0xff] }
  0x88   :  { %v57_v14 = vpop.permute.xlu0 %56 }
  0x89   :  { %vm59_vm1 = vcmp.eq.s32.totalorder %v3386_v13, %v57_v14  ;;  %v3027_v14 = vld [vmem:[#allocation2 + $0x98] sm:$0xff] }
  0x8a   :  { %vm2568_vm2 = vmpackc.low %vm59_vm1, %vm58_vm0  ;;  %vm696_vm0 = vcmask 130048  }
  0x8b   :  { %2569 = vmatmul.msk.bf16.vlgmr.msra.gmra.mxu0 %vm2568_vm2, %v3349_v15  ;;  %v3030_v15 = vld [vmem:[#allocation2 + $0xc0] sm:$0xff] }
 0x108   :  { %v138_v18 = vpop.f32.mrf.mxu0 }
 0x109   :  { %v3390_v19 = vadd.f32 %v138_v18, %v80_v17  ;;  %v3033_v18 = vld [vmem:[#allocation2 + $0xf8] sm:$0xff] }
 0x10b   :  { %v157_v20 = vmul.f32 %v3390_v19, %v3390_v19 }
 0x10d   :  { %v160_v21 = vsel %vm159_vm3, %v157_v20, 0.0  ;;  %v3032_v20 = vld [vmem:[#allocation2 + $0xe0] sm:$0xff] }
 0x10e   :  { %161 = vadd.xlane.f32.xlu1 %v160_v21  ;;  %v3031_v21 = vld [vmem:[#allocation2 + $0xd8] sm:$0xff] }
 0x110   :  { %v140_v22 = vpop.f32.mrf.mxu0 }
 0x111   :  { %v3395_v23 = vadd.f32 %v140_v22, %v80_v17  ;;  %v3029_v17 = vld [vmem:[#allocation2 + $0xb8] sm:$0xff] }
 0x113   :  { %v158_v24 = vmul.f32 %v3395_v23, %v3395_v23 }
 0x115   :  { %v163_v25 = vsel %vm159_vm3, %v158_v24, 0.0 }
 0x116   :  { %164 = vadd.xlane.f32.xlu1 %v163_v25 }
 0x181   :  { %v162_v36 = vpop.xlane.xlu1 %161 }
 0x182   :  { %v173_v40 = vmul.f32 %v3400_v35, %v162_v36 }
 0x184   :  { %v175_v41 = vadd.f32 1e-06, %v173_v40 }
 0x186   :  { %3158 = vrsqrt.f32 %v175_v41  ;;  %vm183_vm6 = vweird.f32 %v175_v41 }
 0x189   :  { %v165_v45 = vpop.xlane.xlu1 %164 }
 0x18a   :  { %v174_v48 = vmul.f32 %v3400_v35, %v165_v45  ;;  %v3120_v45 = vld [vmem:[#allocation5 + $0x10] ss:$0 sm:$0xff] }
 0x18c   :  { %v3159_v50 = vpop.eup %3158  ;;  %v176_v51 = vadd.f32 1e-06, %v174_v48 }
 0x18d   :  { %v178_v52 = vmul.f32 %v3159_v50, %v175_v41  ;;  %vm184_vm5 = vweird.f32 %v3159_v50 }
 0x18e   :  { %3160 = vrsqrt.f32 %v176_v51  ;;  %vm185_vm7 = vmor %vm183_vm6, %vm184_vm5  ;;  %vm193_vm9 = vweird.f32 %v176_v51 }
 0x18f   :  { %v179_v53 = vmul.f32 %v3159_v50, %v178_v52 }
 0x191   :  { %v180_v54 = vmul.f32 0.5, %v179_v53 }
 0x193   :  { %v181_v55 = vsub.f32 1.5, %v180_v54 }
 0x194   :  { %v3161_v56 = vpop.eup %3160 }
 0x195   :  { %v188_v57 = vmul.f32 %v3161_v56, %v176_v51  ;;  %v182_v58 = vmul.f32 %v3159_v50, %v181_v55  ;;  %vm194_vm8 = vweird.f32 %v3161_v56 }
 0x196   :  { %vm195_vm10 = vmor %vm193_vm9, %vm194_vm8 }
 0x197   :  { %v189_v59 = vmul.f32 %v3161_v56, %v188_v57  ;;  %v186_v61 = vsel %vm185_vm7, %v3159_v50, %v182_v58  ;;  %v3126_v50 = vld [vmem:[#allocation5 + $0x50] ss:$0 sm:$0xff] }
 0x198   :  { %v197_v1 = vmul.f32 %v186_v61, %v3390_v19 }
 0x199   :  { %v190_v60 = vmul.f32 0.5, %v189_v59 }
 0x19a   :  { %v201_v4 = vmul.f32 %v3119_v0, %v197_v1 }
 0x19b   :  { %v191_v62 = vsub.f32 1.5, %v190_v60  ;;  %v842_v60 = vld [vmem:[#allocation2 + $0x110] sm:$0xf] }
 0x19c   :  { %v848_v1 = vsel %vm846_vm12, %v842_v60, 0 }
 0x19d   :  { %v192_v63 = vmul.f32 %v3161_v56, %v191_v62  ;;  %v3127_v62 = vld [vmem:[#allocation5 + $0x60] ss:$0 sm:$0xff] }
 0x19f   :  { %v196_v2 = vsel %vm195_vm10, %v3161_v56, %v192_v63 }
 0x1a0   :  { %v198_v3 = vmul.f32 %v196_v2, %v3395_v23  ;;  %v3122_v2 = vld [vmem:[#allocation5 + $0x20] ss:$0 sm:$0xff] }
 0x1a2   :  { %v202_v5 = vmul.f32 %v3119_v0, %v198_v3  ;;  %v3128_v0 = vld [vmem:[#allocation5 + $0x38] ss:$0 sm:$0xff] }
 0x1a4   :  { %v203_v7 = vpack.c.bf16 %v202_v5, %v201_v4 }
 0x1a6   :  { %2578 = vmatmul.msk.bf16.vlgmr.msra.gmra.mxu1 %vm159_vm3, %v203_v7  ;;  %2587 = vmatmul.msk.bf16.vlgmr.msra.gmra.mxu2 %vm159_vm3, %v203_v7 }
 0x1a7   :  { %2596 = vmatmul.msk.bf16.vlgmr.msra.gmra.mxu3 %vm159_vm3, %v203_v7  ;;  %423 = vmatpush.bf16.msra.mxu1 %v3024_v6 }
 0x1a8   :  { %455 = vmatpush.bf16.msra.mxu2 %v3026_v8  ;;  %487 = vmatpush.bf16.msra.mxu3 %v3028_v9 }
 0x1ab   :  { %424 = vmatpush.bf16.msra.mxu1 %v3023_v10 }
 0x1ac   :  { %456 = vmatpush.bf16.msra.mxu2 %v3025_v11  ;;  %488 = vmatpush.bf16.msra.mxu3 %v3027_v14 }
 0x1b6   :  { %2605 = vmatmul.msk.bf16.vlgmr.msrb.gmra.mxu1 %vm159_vm3, %v203_v7  ;;  %2614 = vmatmul.msk.bf16.vlgmr.msrb.gmra.mxu2 %vm159_vm3, %v203_v7 }
 0x1b7   :  { %2623 = vmatmul.msk.bf16.vlgmr.msrb.gmra.mxu3 %vm159_vm3, %v203_v7  ;;  %519 = vmatpush.bf16.msrb.mxu1 %v3030_v15 }
 0x1b8   :  { %583 = vmatpush.bf16.msrb.mxu2 %v3034_v16 }
 0x1bb   :  { %520 = vmatpush.bf16.msrb.mxu1 %v3029_v17 }
 0x1bc   :  { %584 = vmatpush.bf16.msrb.mxu2 %v3033_v18 }
 0x1c6   :  { %2632 = vmatmul.msk.bf16.vlgmr.msra.gmra.mxu1 %vm159_vm3, %v203_v7  ;;  %2641 = vmatmul.msk.bf16.vlgmr.msra.gmra.mxu2 %vm159_vm3, %v203_v7 }
 0x1c7   :  { %2650 = vmatmul.msk.bf16.vlgmr.msra.gmra.mxu3 %vm159_vm3, %v203_v7  ;;  %551 = vmatpush.bf16.msra.mxu1 %v3032_v20  ;;  %v3123_v20 = vld [vmem:[#allocation5 + $0x28] ss:$0 sm:$0xff] }
 0x1cb   :  { %552 = vmatpush.bf16.msra.mxu1 %v3031_v21  ;;  %v3129_v21 = vld [vmem:[#allocation5 + $0x48] ss:$0 sm:$0xff] }
 0x1d6   :  { %2659 = vmatmul.msk.bf16.vlgmr.msrb.gmra.mxu1 %vm159_vm3, %v203_v7  ;;  %2677 = vmatmul.msk.bf16.vlgmr.msrb.gmra.mxu2 %vm159_vm3, %v203_v7 }
 0x1e6   :  { %2668 = vmatmul.msk.bf16.vlgmr.msra.gmra.mxu1 %vm159_vm3, %v203_v7 }
 0x223   :  { %v234_v22 = vpop.f32.mrf.mxu1 }
 0x224   :  { %v235_v53 = vadd.f32 %v3120_v45, %v234_v22 }
 0x229   :  { %v266_v24 = vpop.f32.mrf.mxu2 }
 0x22a   :  { %v298_v25 = vpop.f32.mrf.mxu3  ;;  %v267_v55 = vadd.f32 %v3121_v47, %v266_v24 }
 0x22b   :  { %v236_v26 = vpop.f32.mrf.mxu1  ;;  %v299_v14 = vadd.f32 %v3122_v2, %v298_v25 }
 0x22c   :  { %v237_v49 = vadd.f32 %v3120_v45, %v236_v26  ;;  %v150_v45 = vshra.s32 %v3386_v13, 3 }
 0x22e   :  { %v591_v57 = vpack.c.bf16 %v237_v49, %v235_v53  ;;  %v3351_v49 = vmov -1e+30  }
 0x231   :  { %v268_v27 = vpop.f32.mrf.mxu2 }
 0x232   :  { %v300_v28 = vpop.f32.mrf.mxu3  ;;  %v269_v51 = vadd.f32 %v3121_v47, %v268_v27 }
 0x233   :  { %v3418_v29 = vpop.f32.mrf.mxu1  ;;  %v301_v5 = vadd.f32 %v3122_v2, %v300_v28 }
 0x234   :  { %v618_v61 = vpack.c.bf16 %v269_v51, %v267_v55  ;;  %v331_v26 = vadd.f32 %v3123_v20, %v3418_v29 }
 0x235   :  { %v644_v17 = vpack.c.bf16 %v301_v5, %v299_v14 }
 0x239   :  { %v362_v30 = vpop.f32.mrf.mxu2 }
 0x23a   :  { %v394_v31 = vpop.f32.mrf.mxu3  ;;  %v363_v37 = vadd.f32 %v3124_v33, %v362_v30 }
 0x23b   :  { %v332_v32 = vpop.f32.mrf.mxu1  ;;  %v395_v40 = vadd.f32 %v3125_v34, %v394_v31  ;;  %v3130_v31 = vld [vmem:[#allocation5 + $0x68] ss:$0 sm:$0xff] }
 0x23c   :  { %v333_v22 = vadd.f32 %v3123_v20, %v332_v32  ;;  %v3131_v32 = vld [vmem:[#allocation5 + $0x58] ss:$0 sm:$0xff] }
 0x23e   :  { %v670_v30 = vpack.c.bf16 %v333_v22, %v331_v26 }
 0x241   :  { %v364_v36 = vpop.f32.mrf.mxu2 }
 0x242   :  { %v365_v38 = vadd.f32 %v3124_v33, %v364_v36  ;;  %v396_v39 = vpop.f32.mrf.mxu3 }
 0x243   :  { %v397_v41 = vadd.f32 %v3125_v34, %v396_v39  ;;  %v426_v42 = vpop.f32.mrf.mxu1 }
 0x244   :  { %v592_v43 = vpack.c.bf16 %v365_v38, %v363_v37  ;;  %v427_v58 = vadd.f32 %v3126_v50, %v426_v42 }
 0x245   :  { %v619_v44 = vpack.c.bf16 %v397_v41, %v395_v40 }
 0x246   :  { %v598_v46 = vsel %vm593_vm11, %v592_v43, 0  ;;  %v144_v43 = vshrl.u32 %v50_v12, 7 }
 0x247   :  { %607 = vmatpush.bf16.xpose.msrb.mxu3 %v598_v46  ;;  %v624_v48 = vsel %vm593_vm11, %v619_v44, 0 }
 0x248   :  { %633 = vmatpush.bf16.xpose.msra.mxu2 %v624_v48  ;;  %v148_v44 = vshra.s32 %v144_v43, 3  ;;  %v145_v46 = vadd.s32 8, %v144_v43  ;;  %vm146_vm13 = vcmp.le.s32.totalorder %v3386_v13, %v144_v43 }
 0x249   :  { %v458_v52 = vpop.f32.mrf.mxu2 }
 0x24a   :  { %v490_v54 = vpop.f32.mrf.mxu3  ;;  %v459_v6 = vadd.f32 %v3127_v62, %v458_v52  ;;  %vm151_vm14 = vcmp.eq.s32.totalorder %v148_v44, %v150_v45  ;;  %v149_v47 = vshra.s32 %v145_v46, 3  ;;  %vm147_vm1 = vcmp.le.s32.totalorder %v3386_v13, %v145_v46 }
 0x24b   :  { %v428_v56 = vpop.f32.mrf.mxu1  ;;  %v491_v9 = vadd.f32 %v3128_v0, %v490_v54  ;;  %vm153_vm15 = vmand %vm146_vm13, %vm151_vm14 }
 0x24c   :  { %v429_v59 = vadd.f32 %v3126_v50, %v428_v56  ;;  %v3439_v50 = vsel %vm153_vm15, 0.0, %v3351_v49  ;;  %vm152_vm2 = vcmp.eq.s32.totalorder %v149_v47, %v150_v45 }
 0x24d   :  { %vm154_vm4 = vmand %vm147_vm1, %vm152_vm2 }
 0x24e   :  { %v645_v63 = vpack.c.bf16 %v429_v59, %v427_v58  ;;  %2678 = vmatmul.msk.bf16.vlgmr.msrb.gmra.mxu3 %vm593_vm11, %v591_v57  ;;  %v3444_v54 = vsel %vm154_vm4, 0.0, %v3351_v49 }
 0x24f   :  { %2679 = vmatmul.msk.bf16.vlgmr.msra.gmra.mxu2 %vm593_vm11, %v618_v61 }
 0x250   :  { %v650_v3 = vsel %vm593_vm11, %v645_v63, 0 }
 0x251   :  { %v460_v4 = vpop.f32.mrf.mxu2  ;;  %659 = vmatpush.bf16.xpose.msrb.mxu1 %v650_v3 }
 0x252   :  { %v461_v7 = vadd.f32 %v3127_v62, %v460_v4  ;;  %v492_v8 = vpop.f32.mrf.mxu3 }
 0x253   :  { %v493_v10 = vadd.f32 %v3128_v0, %v492_v8  ;;  %v522_v11 = vpop.f32.mrf.mxu1 }
 0x254   :  { %v671_v15 = vpack.c.bf16 %v461_v7, %v459_v6  ;;  %v523_v28 = vadd.f32 %v3129_v21, %v522_v11 }
 0x255   :  { %v793_v16 = vpack.c.bf16 %v493_v10, %v491_v9 }
 0x256   :  { %v3427_v18 = vsel %vm593_vm11, %v671_v15, 0 }
 0x257   :  { %809 = vmatpush.bf16.msra.mxu3 %v793_v16  ;;  %685 = vmatpush.bf16.xpose.msrb.mxu2 %v3427_v18 }
 0x258   :  { %2680 = vmatmul.msk.bf16.vlgmr.msrb.gmra.mxu1 %vm593_vm11, %v644_v17 }
 0x259   :  { %857 = vmatpush.bf16.msra.mxu1 %v848_v1  ;;  %v586_v24 = vpop.f32.mrf.mxu2 }
 0x25a   :  { %v587_v36 = vadd.f32 %v3130_v31, %v586_v24 }
 0x25b   :  { %v524_v27 = vpop.f32.mrf.mxu1 }
 0x25c   :  { %v525_v25 = vadd.f32 %v3129_v21, %v524_v27 }
 0x25e   :  { %v818_v33 = vpack.c.bf16 %v525_v25, %v523_v28 }
 0x25f   :  { %2681 = vmatmul.msk.bf16.vlgmr.msrb.gmra.mxu2 %vm593_vm11, %v670_v30 }
 0x260   :  { %834 = vmatpush.bf16.msrb.mxu0 %v818_v33 }
 0x261   :  { %v588_v34 = vpop.f32.mrf.mxu2 }
 0x262   :  { %v589_v37 = vadd.f32 %v3130_v31, %v588_v34 }
 0x263   :  { %v554_v38 = vpop.f32.mrf.mxu1 }
 0x264   :  { %v3433_v39 = vpack.c.bf16 %v589_v37, %v587_v36  ;;  %v555_v29 = vadd.f32 %v3131_v32, %v554_v38 }
 0x266   :  { %947 = vmatpush.bf16.msrb.mxu1 %v3433_v39 }
 0x26b   :  { %v556_v40 = vpop.f32.mrf.mxu1 }
 0x26c   :  { %v557_v41 = vadd.f32 %v3131_v32, %v556_v40 }
 0x26e   :  { %v884_v42 = vpack.c.bf16 %v557_v41, %v555_v29 }
 0x270   :  { %900 = vmatpush.bf16.msrb.mxu3 %v884_v42 }
 0x2d1   :  { %v609_v56 = vpop.f32.mrf.mxu3 }
 0x2d2   :  { %v635_v48 = vpop.f32.mrf.mxu2  ;;  %v614_v58 = vmul.f32 0.35355338, %v609_v56 }
 0x2d3   :  { %v640_v51 = vmul.f32 0.35355338, %v635_v48 }
 0x2d4   :  { %v616_v13 = vadd.f32 %v614_v58, %v3439_v50 }
 0x2d5   :  { %v642_v12 = vadd.f32 %v640_v51, %v3439_v50  ;;  %v661_v60 = vpop.f32.mrf.mxu1 }
 0x2d6   :  { %v666_v61 = vmul.f32 0.35355338, %v661_v60  ;;  %v697_v62 = vsel %vm696_vm0, %v616_v13, -inf }
 0x2d7   :  { %v703_v52 = vsel %vm696_vm0, %v642_v12, -inf }
 0x2d8   :  { %704 = vmax.xlane.f32.xlu2 %v703_v52  ;;  %v668_v63 = vadd.f32 %v666_v61, %v3439_v50 }
 0x2d9   :  { %v611_v16 = vpop.f32.mrf.mxu3 }
 0x2da   :  { %v637_v53 = vpop.f32.mrf.mxu2  ;;  %v709_v2 = vsel %vm696_vm0, %v668_v63, -inf  ;;  %v615_v22 = vmul.f32 0.35355338, %v611_v16 }
 0x2db   :  { %v641_v55 = vmul.f32 0.35355338, %v637_v53 }
 0x2dc   :  { %v617_v27 = vadd.f32 %v615_v22, %v3444_v54 }
 0x2dd   :  { %v643_v57 = vadd.f32 %v641_v55, %v3444_v54  ;;  %v663_v28 = vpop.f32.mrf.mxu1 }
 0x2de   :  { %v667_v33 = vmul.f32 0.35355338, %v663_v28  ;;  %v700_v36 = vsel %vm696_vm0, %v617_v27, -inf }
 0x2df   :  { %v706_v59 = vsel %vm696_vm0, %v643_v57, -inf }
 0x2e0   :  { %707 = vmax.xlane.f32.xlu2 %v706_v59  ;;  %v669_v38 = vadd.f32 %v667_v33, %v3444_v54 }
 0x2e2   :  { %v687_v0 = vpop.f32.mrf.mxu2  ;;  %v712_v44 = vsel %vm696_vm0, %v669_v38, -inf }
 0x2e3   :  { %v692_v1 = vmul.f32 0.35355338, %v687_v0 }
 0x2e5   :  { %v694_v3 = vadd.f32 %v692_v1, %v3439_v50 }
 0x2e7   :  { %v715_v4 = vsel %vm696_vm0, %v694_v3, -inf }
 0x2e8   :  { %698 = vmax.xlane.f32.xlu2 %v697_v62 }
 0x2ea   :  { %v689_v32 = vpop.f32.mrf.mxu2 }
 0x2eb   :  { %v693_v42 = vmul.f32 0.35355338, %v689_v32 }
 0x2ed   :  { %v695_v45 = vadd.f32 %v693_v42, %v3444_v54 }
 0x2ef   :  { %v718_v48 = vsel %vm696_vm0, %v695_v45, -inf }
 0x2f0   :  { %710 = vmax.xlane.f32.xlu2 %v709_v2 }
 0x2f8   :  { %716 = vmax.xlane.f32.xlu2 %v715_v4 }
 0x34b   :  { %v705_v5 = vpop.xlane.xlu2 %704 }
 0x34c   :  { %v723_v6 = vsub.f32 %v642_v12, %v705_v5 }
 0x34e   :  { %v733_v7 = vmul.f32 1.442695, %v723_v6 }
 0x350   :  { %3162 = vpow2.f32 %v733_v7 }
 0x353   :  { %v708_v8 = vpop.xlane.xlu2 %707 }
 0x354   :  { %v724_v9 = vsub.f32 %v643_v57, %v708_v8 }
 0x356   :  { %v3163_v10 = vpop.eup %3162  ;;  %v735_v11 = vmul.f32 1.442695, %v724_v9 }
 0x357   :  { %v751_v14 = vsel %vm696_vm0, %v3163_v10, 0.0 }
 0x358   :  { %3164 = vpow2.f32 %v735_v11  ;;  %752 = vadd.xlane.f32.xlu0 %v751_v14 }
 0x35b   :  { %v699_v15 = vpop.xlane.xlu2 %698 }
 0x35c   :  { %v721_v17 = vsub.f32 %v616_v13, %v699_v15 }
 0x35e   :  { %v3165_v20 = vpop.eup %3164  ;;  %v729_v21 = vmul.f32 1.442695, %v721_v17 }
 0x35f   :  { %v754_v24 = vsel %vm696_vm0, %v3165_v20, 0.0 }
 0x360   :  { %3166 = vpow2.f32 %v729_v21  ;;  %755 = vadd.xlane.f32.xlu1 %v754_v24 }
 0x363   :  { %v711_v26 = vpop.xlane.xlu2 %710 }
 0x364   :  { %v725_v25 = vsub.f32 %v668_v63, %v711_v26 }
 0x366   :  { %v3457_v30 = vpop.eup %3166  ;;  %v737_v31 = vmul.f32 1.442695, %v725_v25 }
 0x367   :  { %v745_v34 = vsel %vm696_vm0, %v3457_v30, 0.0 }
 0x368   :  { %3168 = vpow2.f32 %v737_v31  ;;  %746 = vadd.xlane.f32.xlu2 %v745_v34  ;;  %701 = vmax.xlane.f32.xlu1 %v700_v36 }
 0x36b   :  { %v717_v37 = vpop.xlane.xlu2 %716 }
 0x36c   :  { %v727_v40 = vsub.f32 %v694_v3, %v717_v37 }
 0x36e   :  { %v3463_v29 = vpop.eup %3168  ;;  %v741_v41 = vmul.f32 1.442695, %v727_v40 }
 0x36f   :  { %v757_v43 = vsel %vm696_vm0, %v3463_v29, 0.0 }
 0x370   :  { %3170 = vpow2.f32 %v741_v41  ;;  %758 = vadd.xlane.f32.xlu2 %v757_v43  ;;  %713 = vmax.xlane.f32.xlu1 %v712_v44 }
 0x376   :  { %v3469_v46 = vpop.eup %3170 }
 0x377   :  { %v763_v47 = vsel %vm696_vm0, %v3469_v46, 0.0 }
 0x378   :  { %764 = vadd.xlane.f32.xlu2 %v763_v47  ;;  %719 = vmax.xlane.f32.xlu1 %v718_v48 }
 0x3cb   :  { %v753_v49 = vpop.xlane.xlu0 %752 }
 0x3cc   :  { %3172 = vrcp.f32 %v753_v49 }
 0x3d2   :  { %v3173_v12 = vpop.eup %3172 }
 0x3d3   :  { %v756_v51 = vpop.xlane.xlu1 %755  ;;  %v779_v52 = vmul.f32 %v3173_v12, %v3163_v10 }
 0x3d4   :  { %3174 = vrcp.f32 %v756_v51 }
 0x3d5   :  { %v787_v55 = vpack.c.bf16 %v779_v52, %v779_v52 }
 0x3d7   :  { %v821_v60 = vunpack.c.l.b16 %v787_v55 }
 0x3da   :  { %v3175_v53 = vpop.eup %3174 }
 0x3db   :  { %v780_v56 = vmul.f32 %v3175_v53, %v3165_v20  ;;  %v702_v57 = vpop.xlane.xlu1 %701  ;;  %v747_v11 = vpop.xlane.xlu2 %746 }
 0x3dc   :  { %v722_v58 = vsub.f32 %v617_v27, %v702_v57  ;;  %v817_v57 = vld [vmem:[#allocation2 + $0x108] sm:$0xf] }
 0x3dd   :  { %v788_v59 = vpack.c.bf16 %v780_v56, %v780_v56 }
 0x3de   :  { %v731_v13 = vmul.f32 1.442695, %v722_v58 }
 0x3df   :  { %v822_v61 = vunpack.c.l.b16 %v788_v59  ;;  %v908_v59 = vld [vmem:[#allocation2 + $0x118] sm:$0xf] }
 0x3e0   :  { %3176 = vpow2.f32 %v731_v13  ;;  %v913_v13 = vsel %vm846_vm12, %v908_v59, 0 }
 0x3e1   :  { %v823_v62 = vpack.c.b16 %v822_v61, %v821_v60  ;;  %922 = vmatpush.bf16.msra.mxu0 %v913_v13 }
 0x3e3   :  { %2683 = vmatmul.msk.bf16.vlgmr.msrb.gmra.mxu0 %vm696_vm0, %v823_v62  ;;  %v714_v63 = vpop.xlane.xlu1 %713  ;;  %v759_v14 = vpop.xlane.xlu2 %758 }
 0x3e4   :  { %v726_v0 = vsub.f32 %v669_v38, %v714_v63 }
 0x3e6   :  { %v3177_v1 = vpop.eup %3176  ;;  %v739_v2 = vmul.f32 1.442695, %v726_v0 }
 0x3e7   :  { %v748_v3 = vsel %vm696_vm0, %v3177_v1, 0.0 }
 0x3e8   :  { %3178 = vpow2.f32 %v739_v2  ;;  %749 = vadd.xlane.f32.xlu1 %v748_v3 }
 0x3eb   :  { %v720_v4 = vpop.xlane.xlu1 %719  ;;  %v765_v24 = vpop.xlane.xlu2 %764 }
 0x3ec   :  { %v728_v5 = vsub.f32 %v695_v45, %v720_v4 }
 0x3ee   :  { %v3179_v6 = vpop.eup %3178  ;;  %v743_v7 = vmul.f32 1.442695, %v728_v5 }
 0x3ef   :  { %v760_v8 = vsel %vm696_vm0, %v3179_v6, 0.0 }
 0x3f0   :  { %3180 = vpow2.f32 %v743_v7  ;;  %761 = vadd.xlane.f32.xlu1 %v760_v8 }
 0x3f1   :  { %3182 = vrcp.f32 %v747_v11 }
 0x3f6   :  { %v3181_v9 = vpop.eup %3180 }
 0x3f7   :  { %v766_v10 = vsel %vm696_vm0, %v3181_v9, 0.0  ;;  %v3183_v16 = vpop.eup %3182 }
 0x3f8   :  { %767 = vadd.xlane.f32.xlu0 %v766_v10  ;;  %v777_v17 = vmul.f32 %v3183_v16, %v3457_v30  ;;  %v3132_v16 = vld [vmem:[#allocation5 + $0x70] ss:$0 sm:$0xff] }
 0x3fa   :  { %v785_v22 = vpack.c.bf16 %v777_v17, %v777_v17 }
 0x3fc   :  { %v796_v25 = vunpack.c.l.b16 %v785_v22 }
 0x45b   :  { %v750_v15 = vpop.xlane.xlu1 %749 }
 0x45c   :  { %3184 = vrcp.f32 %v750_v15 }
 0x460   :  { %v836_v20 = vpop.f32.mrf.mxu0 }
 0x462   :  { %v3185_v21 = vpop.eup %3184 }
 0x463   :  { %v778_v26 = vmul.f32 %v3185_v21, %v3177_v1  ;;  %v762_v27 = vpop.xlane.xlu1 %761 }
 0x464   :  { %3186 = vrcp.f32 %v762_v27 }
 0x465   :  { %3188 = vrcp.f32 %v759_v14  ;;  %v786_v28 = vpack.c.bf16 %v778_v26, %v778_v26 }
 0x466   :  { %3190 = vrcp.f32 %v765_v24 }
 0x467   :  { %v797_v31 = vunpack.c.l.b16 %v786_v28 }
 0x468   :  { %v838_v33 = vpop.f32.mrf.mxu0 }
 0x469   :  { %v798_v34 = vpack.c.b16 %v797_v31, %v796_v25  ;;  %v841_v36 = vpack.c.bf16 %v838_v33, %v836_v20 }
 0x46a   :  { %v3187_v37 = vpop.eup %3186 }
 0x46b   :  { %v3189_v38 = vpop.eup %3188  ;;  %2684 = vmatmul.msk.bf16.vlgmr.msra.gmra.mxu1 %vm593_vm11, %v841_v36  ;;  %v768_v30 = vpop.xlane.xlu0 %767  ;;  %2682 = vmatmul.msk.bf16.vlgmr.msra.gmra.mxu3 %vm696_vm0, %v798_v34  ;;  %v782_v40 = vmul.f32 %v3187_v37, %v3179_v6  ;;  %v3036_v36 = vld [vmem:[#allocation2 + $0x130] sm:$0xff] }
 0x46c   :  { %v3191_v32 = vpop.eup %3190  ;;  %3192 = vrcp.f32 %v768_v30  ;;  %v781_v41 = vmul.f32 %v3189_v38, %v3463_v29  ;;  %v868_v29 = vsel %vm846_vm12, %v817_v57, 0  ;;  %1050 = vmatpush.bf16.msra.mxu3 %v3036_v36  ;;  %v3035_v38 = vld [vmem:[#allocation2 + $0x128] sm:$0xff] }
 0x46d   :  { %v783_v42 = vmul.f32 %v3191_v32, %v3469_v46  ;;  %v790_v43 = vpack.c.bf16 %v782_v40, %v782_v40  ;;  %877 = vmatpush.bf16.msra.mxu2 %v868_v29  ;;  %v955_v46 = vld [vmem:[#allocation2 + $0x120] sm:$0xf]  ;;  %v3044_v40 = vld [vmem:[#allocation2 + $0x170] sm:$0xff] }
 0x46e   :  { %v789_v45 = vpack.c.bf16 %v781_v41, %v781_v41  ;;  %v960_v58 = vsel %vm846_vm12, %v955_v46, 0  ;;  %v3052_v41 = vld [vmem:[#allocation2 + $0x1b0] sm:$0xff]  ;;  %1125 = vmatpush.bf16.msrb.mxu0 %v3044_v40 }
 0x46f   :  { %v791_v47 = vpack.c.bf16 %v783_v42, %v783_v42  ;;  %v888_v49 = vunpack.c.l.b16 %v790_v43  ;;  %1205 = vmatpush.bf16.msra.mxu1 %v3052_v41  ;;  %v3051_v42 = vld [vmem:[#allocation2 + $0x1a8] sm:$0xff]  ;;  %v3040_v29 = vld [vmem:[#allocation2 + $0x150] sm:$0xff] }
 0x470   :  { %v887_v12 = vunpack.c.l.b16 %v789_v45  ;;  %1051 = vmatpush.bf16.msra.mxu3 %v3035_v38  ;;  %v3048_v46 = vld [vmem:[#allocation2 + $0x190] sm:$0xff] }
 0x471   :  { %v934_v52 = vunpack.c.l.b16 %v791_v47  ;;  %969 = vmatpush.bf16.msrb.mxu2 %v960_v58 }
 0x472   :  { %v3193_v44 = vpop.eup %3192  ;;  %v889_v55 = vpack.c.b16 %v888_v49, %v887_v12  ;;  %v3050_v49 = vld [vmem:[#allocation2 + $0x1a0] sm:$0xff] }
 0x473   :  { %v784_v48 = vmul.f32 %v3193_v44, %v3181_v9  ;;  %1206 = vmatpush.bf16.msra.mxu1 %v3051_v42 }
 0x475   :  { %v792_v51 = vpack.c.bf16 %v784_v48, %v784_v48  ;;  %v3042_v48 = vld [vmem:[#allocation2 + $0x160] sm:$0xff] }
 0x477   :  { %v935_v53 = vunpack.c.l.b16 %v792_v51  ;;  %1207 = vmatpush.bf16.msra.mxu1 %v3050_v49 }
 0x479   :  { %v936_v56 = vpack.c.b16 %v935_v53, %v934_v52  ;;  %v3041_v52 = vld [vmem:[#allocation2 + $0x158] sm:$0xff] }
 0x47a   :  { %v3049_v53 = vld [vmem:[#allocation2 + $0x198] sm:$0xff] }
 0x47b   :  { %2686 = vmatmul.msk.bf16.vlgmr.msrb.gmra.mxu3 %vm696_vm0, %v889_v55  ;;  %2688 = vmatmul.msk.bf16.vlgmr.msrb.gmra.mxu1 %vm696_vm0, %v936_v56 }
 0x47c   :  { %1208 = vmatpush.bf16.msra.mxu1 %v3049_v53 }
 0x480   :  { %1209 = vmatpush.bf16.msra.mxu1 %v3048_v46 }
 0x4e8   :  { %v859_v60 = vpop.f32.mrf.mxu1 }
 0x4ee   :  { %v811_v61 = vpop.f32.mrf.mxu3 }
 0x4f0   :  { %v861_v62 = vpop.f32.mrf.mxu1 }
 0x4f6   :  { %v813_v63 = vpop.f32.mrf.mxu3 }
 0x4f7   :  { %v816_v0 = vpack.c.bf16 %v813_v63, %v811_v61 }
 0x4f8   :  { %v949_v1 = vpop.f32.mrf.mxu1 }
 0x4f9   :  { %2685 = vmatmul.msk.bf16.vlgmr.msra.gmra.mxu2 %vm593_vm11, %v816_v0  ;;  %v3133_v0 = vld [vmem:[#allocation5 + $0x78] ss:$0 sm:$0xff] }
 0x4fe   :  { %v902_v2 = vpop.f32.mrf.mxu3 }
 0x500   :  { %v951_v3 = vpop.f32.mrf.mxu1 }
 0x501   :  { %v954_v5 = vpack.c.bf16 %v951_v3, %v949_v1 }
 0x506   :  { %v904_v4 = vpop.f32.mrf.mxu3 }
 0x507   :  { %v907_v6 = vpack.c.bf16 %v904_v4, %v902_v2 }
 0x509   :  { %2687 = vmatmul.msk.bf16.vlgmr.msra.gmra.mxu0 %vm593_vm11, %v907_v6  ;;  %2689 = vmatmul.msk.bf16.vlgmr.msrb.gmra.mxu2 %vm593_vm11, %v954_v5 }
 0x57c   :  { %v879_v7 = vpop.f32.mrf.mxu2 }
 0x57d   :  { %v880_v10 = vadd.f32 %v879_v7, %v859_v60  ;;  %v3039_v7 = vld [vmem:[#allocation2 + $0x148] sm:$0xff] }
 0x584   :  { %v881_v8 = vpop.f32.mrf.mxu2 }
 0x585   :  { %v882_v21 = vadd.f32 %v881_v8, %v861_v62  ;;  %v3047_v8 = vld [vmem:[#allocation2 + $0x188] sm:$0xff] }
 0x586   :  { %v924_v9 = vpop.f32.mrf.mxu0  ;;  %1210 = vmatpush.bf16.msra.mxu1 %v3047_v8 }
 0x587   :  { %v929_v11 = vadd.f32 %v924_v9, %v880_v10  ;;  %v3038_v9 = vld [vmem:[#allocation2 + $0x140] sm:$0xff] }
 0x588   :  { %v3046_v10 = vld [vmem:[#allocation2 + $0x180] sm:$0xff] }
 0x58a   :  { %1211 = vmatpush.bf16.msra.mxu1 %v3046_v10 }
 0x58c   :  { %v971_v14 = vpop.f32.mrf.mxu2 }
 0x58d   :  { %v976_v15 = vadd.f32 %v971_v14, %v929_v11  ;;  %v3037_v11 = vld [vmem:[#allocation2 + $0x138] sm:$0xff] }
 0x58e   :  { %v926_v20 = vpop.f32.mrf.mxu0  ;;  %v3045_v14 = vld [vmem:[#allocation2 + $0x178] sm:$0xff] }
 0x58f   :  { %v978_v17 = vadd.f32 %v976_v15, %v3390_v19  ;;  %v930_v24 = vadd.f32 %v926_v20, %v882_v21  ;;  %1212 = vmatpush.bf16.msra.mxu1 %v3045_v14 }
 0x591   :  { %v3492_v22 = vadd.f32 %v3132_v16, %v978_v17 }
 0x593   :  { %v984_v26 = vmul.f32 %v3492_v22, %v3492_v22 }
 0x594   :  { %v973_v27 = vpop.f32.mrf.mxu2 }
 0x595   :  { %v977_v28 = vadd.f32 %v973_v27, %v930_v24  ;;  %v986_v25 = vsel %vm159_vm3, %v984_v26, 0.0  ;;  %v3060_v26 = vld [vmem:[#allocation2 + $0x1f0] sm:$0xff]  ;;  %v3059_v27 = vld [vmem:[#allocation2 + $0x1e8] sm:$0xff] }
 0x596   :  { %987 = vadd.xlane.f32.xlu1 %v986_v25  ;;  %1326 = vmatpush.bf16.msra.mxu2 %v3060_v26  ;;  %v3057_v25 = vld [vmem:[#allocation2 + $0x1d8] sm:$0xff] }
 0x597   :  { %v979_v31 = vadd.f32 %v977_v28, %v3395_v23  ;;  %v3043_v23 = vld [vmem:[#allocation2 + $0x168] sm:$0xff]  ;;  %v3058_v28 = vld [vmem:[#allocation2 + $0x1e0] sm:$0xff] }
 0x598   :  { %1126 = vmatpush.bf16.msrb.mxu0 %v3043_v23  ;;  %v3053_v23 = vld [vmem:[#allocation2 + $0x1b8] sm:$0xff] }
 0x599   :  { %v3498_v33 = vadd.f32 %v3132_v16, %v979_v31  ;;  %v3134_v16 = vld [vmem:[#allocation5 + $0x80] ss:$0 sm:$0xff]  ;;  %v3136_v31 = vld [vmem:[#allocation5 + $0x90] ss:$0 sm:$0xff] }
 0x59a   :  { %1327 = vmatpush.bf16.msra.mxu2 %v3059_v27 }
 0x59b   :  { %v985_v19 = vmul.f32 %v3498_v33, %v3498_v33 }
 0x59c   :  { %1127 = vmatpush.bf16.msrb.mxu0 %v3042_v48 }
 0x59d   :  { %v989_v34 = vsel %vm159_vm3, %v985_v19, 0.0  ;;  %v3056_v19 = vld [vmem:[#allocation2 + $0x1d0] sm:$0xff] }
 0x59e   :  { %990 = vadd.xlane.f32.xlu2 %v989_v34  ;;  %1328 = vmatpush.bf16.msra.mxu2 %v3058_v28 }
 0x5a0   :  { %1128 = vmatpush.bf16.msrb.mxu0 %v3041_v52 }
 0x5a2   :  { %1329 = vmatpush.bf16.msra.mxu2 %v3057_v25 }
 0x5a4   :  { %1129 = vmatpush.bf16.msrb.mxu0 %v3040_v29 }
 0x5a6   :  { %1330 = vmatpush.bf16.msra.mxu2 %v3056_v19  ;;  %v3062_v19 = vld [vmem:[#allocation2 + $0x200] sm:$0xff] }
 0x5a7   :  { %1408 = vmatpush.bf16.msrb.mxu3 %v3062_v19 }
 0x5a8   :  { %1130 = vmatpush.bf16.msrb.mxu0 %v3039_v7 }
 0x5ac   :  { %1131 = vmatpush.bf16.msrb.mxu0 %v3038_v9 }
 0x5b0   :  { %1132 = vmatpush.bf16.msrb.mxu0 %v3037_v11 }
 0x609   :  { %v988_v37 = vpop.xlane.xlu1 %987 }
 0x60a   :  { %v992_v30 = vmul.f32 %v988_v37, %v3400_v35  ;;  %v3055_v37 = vld [vmem:[#allocation2 + $0x1c8] sm:$0xff] }
 0x60b   :  { %1331 = vmatpush.bf16.msra.mxu2 %v3055_v37 }
 0x60c   :  { %v994_v32 = vadd.f32 1e-06, %v992_v30 }
 0x60e   :  { %3194 = vrsqrt.f32 %v994_v32  ;;  %vm1002_vm6 = vweird.f32 %v994_v32 }
 0x611   :  { %v991_v43 = vpop.xlane.xlu2 %990 }
 0x612   :  { %v993_v44 = vmul.f32 %v991_v43, %v3400_v35 }
 0x614   :  { %v3195_v45 = vpop.eup %3194  ;;  %v995_v47 = vadd.f32 1e-06, %v993_v44 }
 0x615   :  { %v997_v51 = vmul.f32 %v3195_v45, %v994_v32  ;;  %vm1003_vm5 = vweird.f32 %v3195_v45  ;;  %v3054_v32 = vld [vmem:[#allocation2 + $0x1c0] sm:$0xff] }
 0x616   :  { %3196 = vrsqrt.f32 %v995_v47  ;;  %vm1004_vm7 = vmor %vm1002_vm6, %vm1003_vm5  ;;  %vm1012_vm9 = vweird.f32 %v995_v47  ;;  %1332 = vmatpush.bf16.msra.mxu2 %v3054_v32  ;;  %v3067_v32 = vld [vmem:[#allocation2 + $0x228] sm:$0xff] }
 0x617   :  { %v998_v12 = vmul.f32 %v3195_v45, %v997_v51 }
 0x619   :  { %v999_v55 = vmul.f32 0.5, %v998_v12 }
 0x61a   :  { %1333 = vmatpush.bf16.msra.mxu2 %v3053_v23  ;;  %v3064_v23 = vld [vmem:[#allocation2 + $0x210] sm:$0xff] }
 0x61b   :  { %v1000_v56 = vsub.f32 1.5, %v999_v55 }
 0x61c   :  { %v3197_v57 = vpop.eup %3196 }
 0x61d   :  { %v1007_v58 = vmul.f32 %v3197_v57, %v995_v47  ;;  %v1001_v59 = vmul.f32 %v3195_v45, %v1000_v56  ;;  %vm1013_vm8 = vweird.f32 %v3197_v57 }
 0x61e   :  { %vm1014_vm10 = vmor %vm1012_vm9, %vm1013_vm8 }
 0x61f   :  { %v1008_v13 = vmul.f32 %v3197_v57, %v1007_v58  ;;  %v1005_v61 = vsel %vm1004_vm7, %v3195_v45, %v1001_v59 }
 0x620   :  { %v1016_v1 = vmul.f32 %v1005_v61, %v3492_v22 }
 0x621   :  { %v1009_v60 = vmul.f32 0.5, %v1008_v13 }
 0x622   :  { %v1020_v4 = vmul.f32 %v3133_v0, %v1016_v1 }
 0x623   :  { %v1010_v62 = vsub.f32 1.5, %v1009_v60 }
 0x625   :  { %v1011_v63 = vmul.f32 %v3197_v57, %v1010_v62 }
 0x627   :  { %v1015_v2 = vsel %vm1014_vm10, %v3197_v57, %v1011_v63 }
 0x628   :  { %v1017_v3 = vmul.f32 %v1015_v2, %v3498_v33 }
 0x62a   :  { %v1021_v5 = vmul.f32 %v3133_v0, %v1017_v3  ;;  %v3135_v0 = vld [vmem:[#allocation5 + $0x88] ss:$0 sm:$0xff] }
 0x62c   :  { %v1022_v6 = vpack.c.bf16 %v1021_v5, %v1020_v4 }
 0x62e   :  { %2698 = vmatmul.msk.bf16.vlgmr.msra.gmra.mxu3 %vm159_vm3, %v1022_v6 }
 0x6b1   :  { %v1053_v15 = vpop.f32.mrf.mxu3 }
 0x6b2   :  { %v1054_v20 = vadd.f32 %v3134_v16, %v1053_v15  ;;  %v3137_v15 = vld [vmem:[#allocation5 + $0x98] ss:$0 sm:$0xff] }
 0x6b9   :  { %v1055_v17 = vpop.f32.mrf.mxu3 }
 0x6ba   :  { %v1056_v21 = vadd.f32 %v3134_v16, %v1055_v17 }
 0x6bc   :  { %v1058_v24 = vpack.c.bf16 %v1056_v21, %v1054_v20 }
 0x6be   :  { %1133 = vmatmul.bf16.vlgmr.msrb.gmra.mxu0 %v1058_v24  ;;  %1213 = vmatmul.bf16.vlgmr.msra.gmra.mxu1 %v1058_v24 }
 0x73b   :  { %v1214_v34 = vpop.f32.mrf.mxu1  ;;  %v1134_v53 = vpop.f32.mrf.mxu0 }
 0x73c   :  { %v1215_v36 = vadd.f32 %v3136_v31, %v1214_v34  ;;  %v1135_v7 = vadd.f32 %v3135_v0, %v1134_v53  ;;  %v3068_v34 = vld [vmem:[#allocation2 + $0x230] sm:$0xff] }
 0x73d   :  { %1504 = vmatpush.bf16.msrb.mxu1 %v3068_v34 }
 0x73e   :  { %v1219_v38 = vsub.f32 0.0, %v1215_v36 }
 0x740   :  { %v1221_v30 = vmul.f32 1.442695, %v1219_v38  ;;  %v3061_v38 = vld [vmem:[#allocation2 + $0x1f8] sm:$0xff] }
 0x741   :  { %1409 = vmatpush.bf16.msrb.mxu3 %v3061_v38  ;;  %1505 = vmatpush.bf16.msrb.mxu1 %v3067_v32 }
 0x742   :  { %3198 = vpow2.f32 %v1221_v30  ;;  %v3065_v30 = vld [vmem:[#allocation2 + $0x218] sm:$0xff] }
 0x743   :  { %v1216_v40 = vpop.f32.mrf.mxu1  ;;  %v1136_v2 = vpop.f32.mrf.mxu0 }
 0x744   :  { %v1217_v41 = vadd.f32 %v3136_v31, %v1216_v40  ;;  %v1137_v8 = vadd.f32 %v3135_v0, %v1136_v2  ;;  %v3069_v40 = vld [vmem:[#allocation2 + $0x238] sm:$0xff]  ;;  %v3138_v0 = vld [vmem:[#allocation5 + $0xa0] ss:$0 sm:$0xff] }
 0x745   :  { %1440 = vmatpush.bf16.msra.mxu3 %v3064_v23 }
 0x746   :  { %v1220_v42 = vsub.f32 0.0, %v1217_v41 }
 0x748   :  { %v3199_v43 = vpop.eup %3198  ;;  %v1223_v44 = vmul.f32 1.442695, %v1220_v42  ;;  %v3074_v42 = vld [vmem:[#allocation2 + $0x280] sm:$0xff] }
 0x749   :  { %v1225_v45 = vadd.f32 1.0, %v3199_v43  ;;  %v3076_v43 = vld [vmem:[#allocation2 + $0x250] sm:$0xff] }
 0x74a   :  { %3200 = vpow2.f32 %v1223_v44  ;;  %v3078_v44 = vld [vmem:[#allocation2 + $0x270] sm:$0xff]  ;;  %1632 = vmatpush.bf16.msra.mxu1 %v3076_v43 }
 0x74b   :  { %3202 = vrcp.f32 %v1225_v45  ;;  %v1238_v57 = vand.u32 2147483648, %v1225_v45  ;;  %vm1232_vm14 = vweird.f32 %v1225_v45  ;;  %v1236_v29 = vand.u32 2147483647, %v1225_v45 }
 0x74d   :  { %v1239_v13 = vor.u32 1.1754944e-38, %v1238_v57  ;;  %vm1237_vm1 = vcmp.eq.f32.partialorder %v1236_v29, 8.507059e+37 }
 0x750   :  { %v3201_v47 = vpop.eup %3200 }
 0x751   :  { %v3203_v48 = vpop.eup %3202  ;;  %v1226_v49 = vadd.f32 1.0, %v3201_v47  ;;  %v3063_v47 = vld [vmem:[#allocation2 + $0x208] sm:$0xff] }
 0x752   :  { %v1228_v51 = vmul.f32 %v3203_v48, %v1225_v45  ;;  %vm1233_vm13 = vweird.f32 %v3203_v48  ;;  %1441 = vmatpush.bf16.msra.mxu3 %v3063_v47 }
 0x753   :  { %3204 = vrcp.f32 %v1226_v49  ;;  %vm1234_vm15 = vmor %vm1232_vm14, %vm1233_vm13  ;;  %v1253_v60 = vand.u32 2147483648, %v1226_v49  ;;  %v1251_v62 = vand.u32 2147483647, %v1226_v49  ;;  %vm1247_vm4 = vweird.f32 %v1226_v49 }
 0x754   :  { %v1229_v12 = vsub.f32 1.0, %v1228_v51  ;;  %v3075_v51 = vld [vmem:[#allocation2 + $0x248] sm:$0xff] }
 0x755   :  { %v1254_v3 = vor.u32 1.1754944e-38, %v1253_v60  ;;  %vm1252_vm6 = vcmp.eq.f32.partialorder %v1251_v62, 8.507059e+37  ;;  %1633 = vmatpush.bf16.msra.mxu1 %v3075_v51 }
 0x756   :  { %v1230_v52 = vmul.f32 %v3203_v48, %v1229_v12  ;;  %v3077_v12 = vld [vmem:[#allocation2 + $0x268] sm:$0xff] }
 0x758   :  { %v1231_v55 = vadd.f32 %v3203_v48, %v1230_v52 }
 0x759   :  { %v3205_v56 = vpop.eup %3204 }
 0x75a   :  { %v1243_v46 = vmul.f32 %v3205_v56, %v1226_v49  ;;  %v1235_v58 = vsel %vm1234_vm15, %v3203_v48, %v1231_v55  ;;  %vm1248_vm2 = vweird.f32 %v3205_v56  ;;  %v3073_v48 = vld [vmem:[#allocation2 + $0x278] sm:$0xff] }
 0x75b   :  { %v1240_v63 = vsel %vm1237_vm1, %v1239_v13, %v1235_v58  ;;  %vm1249_vm5 = vmor %vm1247_vm4, %vm1248_vm2 }
 0x75c   :  { %v1244_v59 = vsub.f32 1.0, %v1243_v46  ;;  %v1241_v4 = vmul.f32 %v1240_v63, %v1215_v36  ;;  %v3070_v36 = vld [vmem:[#allocation2 + $0x240] sm:$0xff] }
 0x75d   :  { %1536 = vmatpush.bf16.msrb.mxu2 %v3070_v36 }
 0x75e   :  { %v1245_v61 = vmul.f32 %v3205_v56, %v1244_v59  ;;  %v1257_v10 = vmul.f32 %v1241_v4, %v1135_v7  ;;  %v3072_v7 = vld [vmem:[#allocation2 + $0x260] sm:$0xff] }
 0x760   :  { %v1246_v1 = vadd.f32 %v3205_v56, %v1245_v61 }
 0x761   :  { %1537 = vmatpush.bf16.msrb.mxu2 %v3069_v40 }
 0x762   :  { %v1250_v5 = vsel %vm1249_vm5, %v3205_v56, %v1246_v1 }
 0x763   :  { %v1255_v6 = vsel %vm1252_vm6, %v1254_v3, %v1250_v5 }
 0x764   :  { %v1256_v9 = vmul.f32 %v1255_v6, %v1217_v41 }
 0x766   :  { %v1258_v11 = vmul.f32 %v1256_v9, %v1137_v8  ;;  %v3071_v8 = vld [vmem:[#allocation2 + $0x258] sm:$0xff]  ;;  %v3080_v9 = vld [vmem:[#allocation2 + $0x290] sm:$0xff] }
 0x768   :  { %v1259_v14 = vpack.c.bf16 %v1258_v11, %v1257_v10  ;;  %v3079_v10 = vld [vmem:[#allocation2 + $0x288] sm:$0xff] }
 0x76a   :  { %1334 = vmatmul.bf16.vlgmr.msra.gmra.mxu2 %v1259_v14 }
 0x76b   :  { %1664 = vmatpush.bf16.msra.mxu2 %v3078_v44 }
 0x76f   :  { %1665 = vmatpush.bf16.msra.mxu2 %v3077_v12 }
 0x7ed   :  { %v1335_v16 = vpop.f32.mrf.mxu2 }
 0x7ee   :  { %v1336_v17 = vadd.f32 %v3137_v15, %v1335_v16 }
 0x7f0   :  { %v3509_v20 = vadd.f32 %v1336_v17, %v3492_v22  ;;  %v3066_v22 = vld [vmem:[#allocation2 + $0x220] sm:$0xff] }
 0x7f1   :  { %1472 = vmatpush.bf16.msra.mxu0 %v3066_v22 }
 0x7f2   :  { %v1342_v21 = vmul.f32 %v3509_v20, %v3509_v20 }
 0x7f4   :  { %v1344_v24 = vsel %vm159_vm3, %v1342_v21, 0.0 }
 0x7f5   :  { %v1337_v26 = vpop.f32.mrf.mxu2  ;;  %1345 = vadd.xlane.f32.xlu0 %v1344_v24  ;;  %1473 = vmatpush.bf16.msra.mxu0 %v3065_v30  ;;  %v3141_v30 = vld [vmem:[#allocation5 + $0xa8] ss:$0 sm:$0xff] }
 0x7f6   :  { %v1338_v27 = vadd.f32 %v3137_v15, %v1337_v26  ;;  %v3140_v15 = vld [vmem:[#allocation5 + $0xc0] ss:$0 sm:$0xff] }
 0x7f8   :  { %v3515_v28 = vadd.f32 %v1338_v27, %v3498_v33 }
 0x7f9   :  { %1600 = vmatpush.bf16.msrb.mxu0 %v3074_v42 }
 0x7fa   :  { %v1343_v25 = vmul.f32 %v3515_v28, %v3515_v28 }
 0x7fc   :  { %v1347_v31 = vsel %vm159_vm3, %v1343_v25, 0.0  ;;  %v3142_v25 = vld [vmem:[#allocation5 + $0xc8] ss:$0 sm:$0xff] }
 0x7fd   :  { %1348 = vadd.xlane.f32.xlu1 %v1347_v31  ;;  %1601 = vmatpush.bf16.msrb.mxu0 %v3073_v48  ;;  %v1949_v48 = vld [vmem:[#allocation2 + $0x2a0] sm:$0xf] }
 0x868   :  { %v1346_v37 = vpop.xlane.xlu0 %1345 }
 0x869   :  { %v1350_v33 = vmul.f32 %v1346_v37, %v3400_v35 }
 0x86b   :  { %v1352_v41 = vadd.f32 1e-06, %v1350_v33  ;;  %v3143_v33 = vld [vmem:[#allocation5 + $0xe8] ss:$0 sm:$0xff] }
 0x86d   :  { %3206 = vrsqrt.f32 %v1352_v41  ;;  %vm1360_vm8 = vweird.f32 %v1352_v41 }
 0x870   :  { %v1349_v45 = vpop.xlane.xlu1 %1348 }
 0x871   :  { %v1351_v49 = vmul.f32 %v1349_v45, %v3400_v35 }
 0x873   :  { %v3207_v52 = vpop.eup %3206  ;;  %v1353_v53 = vadd.f32 1e-06, %v1351_v49 }
 0x874   :  { %v1355_v55 = vmul.f32 %v3207_v52, %v1352_v41  ;;  %vm1361_vm7 = vweird.f32 %v3207_v52  ;;  %v3144_v41 = vld [vmem:[#allocation5 + $0xd0] ss:$0 sm:$0xff] }
 0x875   :  { %3208 = vrsqrt.f32 %v1353_v53  ;;  %vm1362_vm9 = vmor %vm1360_vm8, %vm1361_vm7  ;;  %vm1370_vm13 = vweird.f32 %v1353_v53 }
 0x876   :  { %v1356_v56 = vmul.f32 %v3207_v52, %v1355_v55  ;;  %v1954_v55 = vsel %vm846_vm12, %v1949_v48, 0 }
 0x878   :  { %v1357_v57 = vmul.f32 0.5, %v1356_v56  ;;  %v3139_v56 = vld [vmem:[#allocation5 + $0xb8] ss:$0 sm:$0xff] }
 0x87a   :  { %v1358_v29 = vsub.f32 1.5, %v1357_v57 }
 0x87b   :  { %v3209_v46 = vpop.eup %3208 }
 0x87c   :  { %v1365_v58 = vmul.f32 %v3209_v46, %v1353_v53  ;;  %v1359_v59 = vmul.f32 %v3207_v52, %v1358_v29  ;;  %vm1371_vm10 = vweird.f32 %v3209_v46 }
 0x87d   :  { %vm1372_vm14 = vmor %vm1370_vm13, %vm1371_vm10 }
 0x87e   :  { %v1366_v13 = vmul.f32 %v3209_v46, %v1365_v58  ;;  %v1363_v61 = vsel %vm1362_vm9, %v3207_v52, %v1359_v59 }
 0x87f   :  { %v1374_v1 = vmul.f32 %v1363_v61, %v3509_v20  ;;  %v3147_v61 = vld [vmem:[#allocation5 + $0xd8] ss:$0 sm:$0xff] }
 0x880   :  { %v1367_v60 = vmul.f32 0.5, %v1366_v13 }
 0x881   :  { %v1378_v4 = vmul.f32 %v3138_v0, %v1374_v1 }
 0x882   :  { %v1368_v62 = vsub.f32 1.5, %v1367_v60 }
 0x884   :  { %v1369_v63 = vmul.f32 %v3209_v46, %v1368_v62 }
 0x886   :  { %v1373_v2 = vsel %vm1372_vm14, %v3209_v46, %v1369_v63  ;;  %v3146_v63 = vld [vmem:[#allocation5 + $0xe0] ss:$0 sm:$0xff]  ;;  %vm2453_vm14 = vcmask 1040384  }
 0x887   :  { %v1375_v3 = vmul.f32 %v1373_v2, %v3515_v28 }
 0x889   :  { %v1379_v5 = vmul.f32 %v3138_v0, %v1375_v3 }
 0x88b   :  { %v1380_v6 = vpack.c.bf16 %v1379_v5, %v1378_v4 }
 0x88d   :  { %2803 = vmatmul.msk.bf16.vlgmr.msrb.gmra.mxu3 %vm159_vm3, %v1380_v6  ;;  %2821 = vmatmul.msk.bf16.vlgmr.msra.gmra.mxu0 %vm159_vm3, %v1380_v6 }
 0x88e   :  { %2830 = vmatmul.msk.bf16.vlgmr.msrb.gmra.mxu1 %vm159_vm3, %v1380_v6  ;;  %2839 = vmatmul.msk.bf16.vlgmr.msrb.gmra.mxu2 %vm159_vm3, %v1380_v6 }
 0x88f   :  { %1568 = vmatpush.bf16.msrb.mxu3 %v3072_v7 }
 0x893   :  { %1569 = vmatpush.bf16.msrb.mxu3 %v3071_v8 }
 0x89d   :  { %2812 = vmatmul.msk.bf16.vlgmr.msra.gmra.mxu3 %vm159_vm3, %v1380_v6  ;;  %2857 = vmatmul.msk.bf16.vlgmr.msrb.gmra.mxu0 %vm159_vm3, %v1380_v6 }
 0x89e   :  { %2866 = vmatmul.msk.bf16.vlgmr.msra.gmra.mxu1 %vm159_vm3, %v1380_v6  ;;  %2875 = vmatmul.msk.bf16.vlgmr.msra.gmra.mxu2 %vm159_vm3, %v1380_v6 }
 0x89f   :  { %1696 = vmatpush.bf16.msra.mxu3 %v3080_v9 }
 0x8a3   :  { %1697 = vmatpush.bf16.msra.mxu3 %v3079_v10 }
 0x8ad   :  { %2848 = vmatmul.msk.bf16.vlgmr.msrb.gmra.mxu3 %vm159_vm3, %v1380_v6 }
 0x8ae   :  { %1793 = vmatpush.bf16.xpose.msrb.mxu3 %v3427_v18 }
 0x8bd   :  { %2884 = vmatmul.msk.bf16.vlgmr.msra.gmra.mxu3 %vm159_vm3, %v1380_v6  ;;  %v3145_v6 = vld [vmem:[#allocation5 + $0xb0] ss:$0 sm:$0xff] }
 0x90a   :  { %v1475_v11 = vpop.f32.mrf.mxu0 }
 0x90b   :  { %v1507_v14 = vpop.f32.mrf.mxu1  ;;  %v1476_v58 = vadd.f32 %v3139_v56, %v1475_v11 }
 0x90c   :  { %v1508_v26 = vadd.f32 %v3140_v15, %v1507_v14 }
 0x910   :  { %v1411_v16 = vpop.f32.mrf.mxu3 }
 0x911   :  { %v1539_v17 = vpop.f32.mrf.mxu2  ;;  %v1412_v42 = vadd.f32 %v3141_v30, %v1411_v16 }
 0x912   :  { %v1477_v21 = vpop.f32.mrf.mxu0  ;;  %v1540_v34 = vadd.f32 %v3142_v25, %v1539_v17 }
 0x913   :  { %v1509_v24 = vpop.f32.mrf.mxu1  ;;  %v1478_v46 = vadd.f32 %v3139_v56, %v1477_v21 }
 0x914   :  { %v1510_v27 = vadd.f32 %v3140_v15, %v1509_v24 }
 0x915   :  { %v1756_v13 = vpack.c.bf16 %v1478_v46, %v1476_v58 }
 0x916   :  { %v1782_v31 = vpack.c.bf16 %v1510_v27, %v1508_v26 }
 0x918   :  { %2888 = vmatmul.msk.bf16.vlgmr.msrb.gmra.mxu3 %vm593_vm11, %v1782_v31  ;;  %v1413_v19 = vpop.f32.mrf.mxu3 }
 0x919   :  { %v1541_v22 = vpop.f32.mrf.mxu2  ;;  %v1414_v40 = vadd.f32 %v3141_v30, %v1413_v19 }
 0x91a   :  { %v1542_v36 = vadd.f32 %v3142_v25, %v1541_v22  ;;  %v1603_v18 = vpop.f32.mrf.mxu0 }
 0x91b   :  { %v1635_v37 = vpop.f32.mrf.mxu1  ;;  %v1604_v44 = vadd.f32 %v3143_v33, %v1603_v18  ;;  %v1704_v49 = vpack.c.bf16 %v1414_v40, %v1412_v42 }
 0x91c   :  { %v1705_v38 = vpack.c.bf16 %v1542_v36, %v1540_v34  ;;  %v1636_v51 = vadd.f32 %v3144_v41, %v1635_v37 }
 0x91e   :  { %v1710_v32 = vsel %vm593_vm11, %v1705_v38, 0 }
 0x91f   :  { %1719 = vmatpush.bf16.xpose.msra.mxu0 %v1710_v32 }
 0x920   :  { %v1443_v23 = vpop.f32.mrf.mxu3 }
 0x921   :  { %v1667_v59 = vpop.f32.mrf.mxu2  ;;  %v1444_v11 = vadd.f32 %v3145_v6, %v1443_v23 }
 0x922   :  { %v1605_v43 = vpop.f32.mrf.mxu0  ;;  %v1668_v4 = vadd.f32 %v3146_v63, %v1667_v59 }
 0x923   :  { %v1606_v45 = vadd.f32 %v3143_v33, %v1605_v43  ;;  %v1637_v47 = vpop.f32.mrf.mxu1 }
 0x924   :  { %v1638_v12 = vadd.f32 %v3144_v41, %v1637_v47 }
 0x925   :  { %v1757_v52 = vpack.c.bf16 %v1606_v45, %v1604_v44 }
 0x926   :  { %v1900_v53 = vpack.c.bf16 %v1638_v12, %v1636_v51  ;;  %2885 = vmatmul.msk.bf16.vlgmr.msra.gmra.mxu0 %vm593_vm11, %v1704_v49 }
 0x927   :  { %v1762_v57 = vsel %vm593_vm11, %v1757_v52, 0 }
 0x928   :  { %1916 = vmatpush.bf16.msrb.mxu0 %v1900_v53  ;;  %v1445_v29 = vpop.f32.mrf.mxu3  ;;  %1771 = vmatpush.bf16.xpose.msrb.mxu2 %v1762_v57 }
 0x929   :  { %v1669_v62 = vpop.f32.mrf.mxu2  ;;  %v1446_v9 = vadd.f32 %v3145_v6, %v1445_v29 }
 0x92a   :  { %v1670_v1 = vadd.f32 %v3146_v63, %v1669_v62 }
 0x92b   :  { %v1730_v14 = vpack.c.bf16 %v1446_v9, %v1444_v11 }
 0x92c   :  { %v1925_v7 = vpack.c.bf16 %v1670_v1, %v1668_v4 }
 0x92f   :  { %2887 = vmatmul.msk.bf16.vlgmr.msrb.gmra.mxu2 %vm593_vm11, %v1756_v13 }
 0x930   :  { %1963 = vmatpush.bf16.msra.mxu2 %v1954_v55  ;;  %v1571_v60 = vpop.f32.mrf.mxu3 }
 0x931   :  { %v1572_v2 = vadd.f32 %v3147_v61, %v1571_v60 }
 0x934   :  { %2052 = vmatpush.bf16.msrb.mxu2 %v3433_v39  ;;  %v3148_v39 = vld [vmem:[#allocation5 + $0xf0] ss:$0 sm:$0xff] }
 0x938   :  { %v1573_v0 = vpop.f32.mrf.mxu3 }
 0x939   :  { %v1574_v3 = vadd.f32 %v3147_v61, %v1573_v0 }
 0x93b   :  { %v1731_v5 = vpack.c.bf16 %v1574_v3, %v1572_v2 }
 0x93d   :  { %v1736_v8 = vsel %vm593_vm11, %v1731_v5, 0 }
 0x93e   :  { %1745 = vmatpush.bf16.xpose.msrb.mxu1 %v1736_v8 }
 0x940   :  { %v1699_v10 = vpop.f32.mrf.mxu3 }
 0x941   :  { %v1700_v16 = vadd.f32 %v3148_v39, %v1699_v10 }
 0x945   :  { %2886 = vmatmul.msk.bf16.vlgmr.msrb.gmra.mxu1 %vm593_vm11, %v1730_v14 }
 0x946   :  { %1941 = vmatpush.bf16.msra.mxu1 %v1925_v7 }
 0x948   :  { %v1701_v15 = vpop.f32.mrf.mxu3 }
 0x949   :  { %v1702_v17 = vadd.f32 %v3148_v39, %v1701_v15 }
 0x94b   :  { %v1990_v21 = vpack.c.bf16 %v1702_v17, %v1700_v16 }
 0x94d   :  { %2006 = vmatpush.bf16.msra.mxu0 %v1990_v21 }
 0x99b   :  { %v1795_v31 = vpop.f32.mrf.mxu3 }
 0x99c   :  { %v1800_v46 = vmul.f32 0.35355338, %v1795_v31 }
 0x99e   :  { %v1802_v61 = vadd.f32 %v1800_v46, %v3439_v50 }
 0x9a0   :  { %v1822_v4 = vsel %vm696_vm0, %v1802_v61, -inf }
 0x9a3   :  { %v1721_v34 = vpop.f32.mrf.mxu0  ;;  %v1797_v30 = vpop.f32.mrf.mxu3 }
 0x9a4   :  { %v1726_v18 = vmul.f32 0.35355338, %v1721_v34  ;;  %v1801_v32 = vmul.f32 0.35355338, %v1797_v30 }
 0x9a6   :  { %v1728_v38 = vadd.f32 %v1726_v18, %v3439_v50  ;;  %v1803_v40 = vadd.f32 %v1801_v32, %v3444_v54 }
 0x9a8   :  { %v1804_v33 = vsel %vm696_vm0, %v1728_v38, -inf  ;;  %v1825_v41 = vsel %vm696_vm0, %v1803_v40, -inf }
 0x9ab   :  { %v1723_v45 = vpop.f32.mrf.mxu0 }
 0x9ac   :  { %v1727_v51 = vmul.f32 0.35355338, %v1723_v45 }
 0x9ae   :  { %v1729_v55 = vadd.f32 %v1727_v51, %v3444_v54 }
 0x9b0   :  { %v1807_v59 = vsel %vm696_vm0, %v1729_v55, -inf }
 0x9b2   :  { %v1773_v52 = vpop.f32.mrf.mxu2 }
 0x9b3   :  { %v1778_v13 = vmul.f32 0.35355338, %v1773_v52 }
 0x9b5   :  { %v1780_v0 = vadd.f32 %v1778_v13, %v3439_v50 }
 0x9b7   :  { %v1816_v6 = vsel %vm696_vm0, %v1780_v0, -inf }
 0x9ba   :  { %v1775_v62 = vpop.f32.mrf.mxu2 }
 0x9bb   :  { %v1779_v3 = vmul.f32 0.35355338, %v1775_v62 }
 0x9bd   :  { %v1781_v7 = vadd.f32 %v1779_v3, %v3444_v54 }
 0x9c2   :  { %v1747_v24 = vpop.f32.mrf.mxu1 }
 0x9c3   :  { %v1752_v26 = vmul.f32 0.35355338, %v1747_v24 }
 0x9c5   :  { %v1754_v27 = vadd.f32 %v1752_v26, %v3439_v50  ;;  %v1819_v50 = vsel %vm696_vm0, %v1781_v7, -inf }
 0x9c7   :  { %v1810_v25 = vsel %vm696_vm0, %v1754_v27, -inf }
 0x9c8   :  { %1811 = vmax.xlane.f32.xlu2 %v1810_v25 }
 0x9ca   :  { %v1749_v19 = vpop.f32.mrf.mxu1 }
 0x9cb   :  { %v1753_v22 = vmul.f32 0.35355338, %v1749_v19 }
 0x9cd   :  { %v1755_v36 = vadd.f32 %v1753_v22, %v3444_v54 }
 0x9cf   :  { %v1813_v37 = vsel %vm696_vm0, %v1755_v36, -inf }
 0x9d0   :  { %1814 = vmax.xlane.f32.xlu0 %v1813_v37 }
 0x9d8   :  { %1805 = vmax.xlane.f32.xlu0 %v1804_v33 }
 0x9e0   :  { %1826 = vmax.xlane.f32.xlu0 %v1825_v41 }
 0xa3b   :  { %v1812_v23 = vpop.xlane.xlu2 %1811 }
 0xa3c   :  { %v1830_v42 = vsub.f32 %v1754_v27, %v1812_v23 }
 0xa3e   :  { %v1840_v43 = vmul.f32 1.442695, %v1830_v42 }
 0xa40   :  { %3210 = vpow2.f32 %v1840_v43 }
 0xa43   :  { %v1815_v44 = vpop.xlane.xlu0 %1814 }
 0xa44   :  { %v1831_v47 = vsub.f32 %v1755_v36, %v1815_v44 }
 0xa46   :  { %v3211_v48 = vpop.eup %3210  ;;  %v1842_v49 = vmul.f32 1.442695, %v1831_v47 }
 0xa47   :  { %v1858_v12 = vsel %vm696_vm0, %v3211_v48, 0.0 }
 0xa48   :  { %3212 = vpow2.f32 %v1842_v49  ;;  %1859 = vadd.xlane.f32.xlu1 %v1858_v12 }
 0xa4b   :  { %v1806_v53 = vpop.xlane.xlu0 %1805 }
 0xa4c   :  { %v1828_v56 = vsub.f32 %v1728_v38, %v1806_v53 }
 0xa4e   :  { %v3213_v57 = vpop.eup %3212  ;;  %v1836_v29 = vmul.f32 1.442695, %v1828_v56 }
 0xa4f   :  { %v1861_v58 = vsel %vm696_vm0, %v3213_v57, 0.0 }
 0xa50   :  { %3214 = vpow2.f32 %v1836_v29  ;;  %1862 = vadd.xlane.f32.xlu2 %v1861_v58  ;;  %1808 = vmax.xlane.f32.xlu1 %v1807_v59 }
 0xa53   :  { %v1827_v60 = vpop.xlane.xlu0 %1826 }
 0xa54   :  { %v1835_v63 = vsub.f32 %v1803_v40, %v1827_v60 }
 0xa56   :  { %v3558_v1 = vpop.eup %3214  ;;  %v1850_v2 = vmul.f32 1.442695, %v1835_v63 }
 0xa57   :  { %v1852_v5 = vsel %vm696_vm0, %v3558_v1, 0.0 }
 0xa58   :  { %3216 = vpow2.f32 %v1850_v2  ;;  %1823 = vmax.xlane.f32.xlu2 %v1822_v4  ;;  %1853 = vadd.xlane.f32.xlu0 %v1852_v5 }
 0xa59   :  { %1817 = vmax.xlane.f32.xlu1 %v1816_v6 }
 0xa5e   :  { %v3565_v8 = vpop.eup %3216 }
 0xa5f   :  { %v1873_v9 = vsel %vm696_vm0, %v3565_v8, 0.0 }
 0xa60   :  { %1820 = vmax.xlane.f32.xlu2 %v1819_v50  ;;  %1874 = vadd.xlane.f32.xlu0 %v1873_v9 }
 0xabb   :  { %v1860_v10 = vpop.xlane.xlu1 %1859 }
 0xabc   :  { %3218 = vrcp.f32 %v1860_v10 }
 0xac2   :  { %v3219_v39 = vpop.eup %3218 }
 0xac3   :  { %v1863_v11 = vpop.xlane.xlu2 %1862  ;;  %v1809_v14 = vpop.xlane.xlu1 %1808  ;;  %v1886_v17 = vmul.f32 %v3219_v39, %v3211_v48 }
 0xac4   :  { %3220 = vrcp.f32 %v1863_v11  ;;  %v1829_v15 = vsub.f32 %v1729_v55, %v1809_v14 }
 0xac5   :  { %v1894_v21 = vpack.c.bf16 %v1886_v17, %v1886_v17 }
 0xac6   :  { %v1838_v16 = vmul.f32 1.442695, %v1829_v15 }
 0xac7   :  { %v1928_v36 = vunpack.c.l.b16 %v1894_v21 }
 0xac8   :  { %3222 = vpow2.f32 %v1838_v16 }
 0xaca   :  { %v3221_v54 = vpop.eup %3220 }
 0xacb   :  { %v1887_v24 = vmul.f32 %v3221_v54, %v3213_v57  ;;  %v1824_v26 = vpop.xlane.xlu2 %1823  ;;  %v1854_v47 = vpop.xlane.xlu0 %1853  ;;  %v1924_v54 = vld [vmem:[#allocation2 + $0x298] sm:$0xf] }
 0xacc   :  { %v1834_v27 = vsub.f32 %v1802_v61, %v1824_v26  ;;  %v1818_v25 = vpop.xlane.xlu1 %1817  ;;  %v1974_v21 = vsel %vm846_vm12, %v1924_v54, 0 }
 0xacd   :  { %v1895_v31 = vpack.c.bf16 %v1887_v24, %v1887_v24  ;;  %v1832_v19 = vsub.f32 %v1780_v0, %v1818_v25  ;;  %1983 = vmatpush.bf16.msra.mxu3 %v1974_v21  ;;  %v2014_v24 = vld [vmem:[#allocation2 + $0x2a8] sm:$0xf] }
 0xace   :  { %v3223_v22 = vpop.eup %3222  ;;  %v1848_v34 = vmul.f32 1.442695, %v1834_v27  ;;  %v2019_v26 = vsel %vm846_vm12, %v2014_v24, 0 }
 0xacf   :  { %v1929_v18 = vunpack.c.l.b16 %v1895_v31  ;;  %v1844_v37 = vmul.f32 1.442695, %v1832_v19  ;;  %v1855_v38 = vsel %vm696_vm0, %v3223_v22, 0.0  ;;  %2028 = vmatpush.bf16.msrb.mxu1 %v2019_v26 }
 0xad0   :  { %3224 = vpow2.f32 %v1848_v34  ;;  %1856 = vadd.xlane.f32.xlu1 %v1855_v38 }
 0xad1   :  { %v1930_v30 = vpack.c.b16 %v1929_v18, %v1928_v36  ;;  %3226 = vpow2.f32 %v1844_v37 }
 0xad3   :  { %2890 = vmatmul.msk.bf16.vlgmr.msra.gmra.mxu1 %vm696_vm0, %v1930_v30  ;;  %v1821_v32 = vpop.xlane.xlu2 %1820  ;;  %v1875_v13 = vpop.xlane.xlu0 %1874 }
 0xad4   :  { %v1833_v33 = vsub.f32 %v1781_v7, %v1821_v32 }
 0xad6   :  { %v3225_v40 = vpop.eup %3224  ;;  %v1846_v41 = vmul.f32 1.442695, %v1833_v33 }
 0xad7   :  { %v3227_v23 = vpop.eup %3226  ;;  %v1870_v42 = vsel %vm696_vm0, %v3225_v40, 0.0 }
 0xad8   :  { %3228 = vpow2.f32 %v1846_v41  ;;  %1871 = vadd.xlane.f32.xlu2 %v1870_v42  ;;  %v1864_v43 = vsel %vm696_vm0, %v3227_v23, 0.0 }
 0xad9   :  { %1865 = vadd.xlane.f32.xlu1 %v1864_v43  ;;  %3230 = vrcp.f32 %v1854_v47 }
 0xade   :  { %v3229_v44 = vpop.eup %3228 }
 0xadf   :  { %v1867_v45 = vsel %vm696_vm0, %v3229_v44, 0.0  ;;  %v3231_v49 = vpop.eup %3230 }
 0xae0   :  { %1868 = vadd.xlane.f32.xlu2 %v1867_v45  ;;  %v1884_v51 = vmul.f32 %v3231_v49, %v3558_v1  ;;  %v3149_v45 = vld [vmem:[#allocation5 + $0xf8] ss:$0 sm:$0xff] }
 0xae2   :  { %v1892_v52 = vpack.c.bf16 %v1884_v51, %v1884_v51 }
 0xae4   :  { %v1903_v29 = vunpack.c.l.b16 %v1892_v52 }
 0xb43   :  { %v1857_v48 = vpop.xlane.xlu1 %1856 }
 0xb44   :  { %3232 = vrcp.f32 %v1857_v48 }
 0xb4a   :  { %v3233_v12 = vpop.eup %3232 }
 0xb4b   :  { %v1885_v53 = vmul.f32 %v3233_v12, %v3223_v22  ;;  %v1872_v55 = vpop.xlane.xlu2 %1871 }
 0xb4c   :  { %v1866_v56 = vpop.xlane.xlu1 %1865 }
 0xb4d   :  { %v1893_v57 = vpack.c.bf16 %v1885_v53, %v1885_v53  ;;  %3234 = vrcp.f32 %v1866_v56 }
 0xb4e   :  { %3236 = vrcp.f32 %v1872_v55 }
 0xb4f   :  { %v1904_v46 = vunpack.c.l.b16 %v1893_v57 }
 0xb50   :  { %v1943_v58 = vpop.f32.mrf.mxu1 }
 0xb51   :  { %v1905_v59 = vpack.c.b16 %v1904_v46, %v1903_v29 }
 0xb53   :  { %v1869_v60 = vpop.xlane.xlu2 %1868  ;;  %2889 = vmatmul.msk.bf16.vlgmr.msrb.gmra.mxu0 %vm696_vm0, %v1905_v59  ;;  %v3235_v61 = vpop.eup %3234 }
 0xb54   :  { %3238 = vrcp.f32 %v1869_v60  ;;  %v1888_v62 = vmul.f32 %v3235_v61, %v3227_v23  ;;  %v3237_v0 = vpop.eup %3236  ;;  %v3081_v60 = vld [vmem:[#allocation2 + $0x2b8] sm:$0xff] }
 0xb55   :  { %3240 = vrcp.f32 %v1875_v13  ;;  %v1890_v6 = vmul.f32 %v3237_v0, %v3225_v40  ;;  %v3097_v0 = vld [vmem:[#allocation2 + $0x338] sm:$0xff] }
 0xb56   :  { %v1896_v3 = vpack.c.bf16 %v1888_v62, %v1888_v62  ;;  %v3090_v62 = vld [vmem:[#allocation2 + $0x300] sm:$0xff] }
 0xb57   :  { %v1898_v11 = vpack.c.bf16 %v1890_v6, %v1890_v6  ;;  %2230 = vmatpush.bf16.msra.mxu1 %v3090_v62  ;;  %v3096_v6 = vld [vmem:[#allocation2 + $0x330] sm:$0xff] }
 0xb58   :  { %v1945_v63 = vpop.f32.mrf.mxu1  ;;  %v1993_v9 = vunpack.c.l.b16 %v1896_v3 }
 0xb59   :  { %v1948_v1 = vpack.c.bf16 %v1945_v63, %v1943_v58  ;;  %v2039_v15 = vunpack.c.l.b16 %v1898_v11  ;;  %v3082_v58 = vld [vmem:[#allocation2 + $0x2c0] sm:$0xff] }
 0xb5a   :  { %v3239_v2 = vpop.eup %3238  ;;  %2155 = vmatpush.bf16.msrb.mxu0 %v3082_v58  ;;  %v3098_v63 = vld [vmem:[#allocation2 + $0x340] sm:$0xff]  ;;  %v3100_v58 = vld [vmem:[#allocation2 + $0x350] sm:$0xff] }
 0xb5b   :  { %v1889_v4 = vmul.f32 %v3239_v2, %v3229_v44  ;;  %2891 = vmatmul.msk.bf16.vlgmr.msra.gmra.mxu2 %vm593_vm11, %v1948_v1  ;;  %v3241_v5 = vpop.eup %3240 }
 0xb5c   :  { %v1891_v50 = vmul.f32 %v3241_v5, %v3565_v8  ;;  %v2060_v8 = vld [vmem:[#allocation2 + $0x2b0] sm:$0xf]  ;;  %2310 = vmatpush.bf16.msra.mxu2 %v3098_v63 }
 0xb5d   :  { %v1897_v7 = vpack.c.bf16 %v1889_v4, %v1889_v4  ;;  %v2065_v27 = vsel %vm846_vm12, %v2060_v8, 0  ;;  %v3088_v5 = vld [vmem:[#allocation2 + $0x2f0] sm:$0xff] }
 0xb5e   :  { %v1899_v39 = vpack.c.bf16 %v1891_v50, %v1891_v50  ;;  %2074 = vmatpush.bf16.msrb.mxu3 %v2065_v27  ;;  %2156 = vmatpush.bf16.msrb.mxu0 %v3081_v60 }
 0xb5f   :  { %v1994_v10 = vunpack.c.l.b16 %v1897_v7 }
 0xb60   :  { %v2040_v16 = vunpack.c.l.b16 %v1899_v39  ;;  %2311 = vmatpush.bf16.msra.mxu2 %v3097_v0 }
 0xb61   :  { %v1995_v14 = vpack.c.b16 %v1994_v10, %v1993_v9  ;;  %v3087_v9 = vld [vmem:[#allocation2 + $0x2e8] sm:$0xff] }
 0xb62   :  { %v2041_v17 = vpack.c.b16 %v2040_v16, %v2039_v15  ;;  %v3095_v10 = vld [vmem:[#allocation2 + $0x328] sm:$0xff]  ;;  %v3086_v15 = vld [vmem:[#allocation2 + $0x2e0] sm:$0xff] }
 0xb63   :  { %2893 = vmatmul.msk.bf16.vlgmr.msra.gmra.mxu0 %vm696_vm0, %v1995_v14  ;;  %v3094_v16 = vld [vmem:[#allocation2 + $0x320] sm:$0xff] }
 0xb64   :  { %2312 = vmatpush.bf16.msra.mxu2 %v3096_v6 }
 0xb68   :  { %2313 = vmatpush.bf16.msra.mxu2 %v3095_v10 }
 0xb6b   :  { %2895 = vmatmul.msk.bf16.vlgmr.msrb.gmra.mxu2 %vm696_vm0, %v2041_v17 }
 0xb6c   :  { %2314 = vmatpush.bf16.msra.mxu2 %v3094_v16 }
 0xbd0   :  { %v1918_v25 = vpop.f32.mrf.mxu0 }
 0xbd8   :  { %v1920_v31 = vpop.f32.mrf.mxu0 }
 0xbd9   :  { %v1923_v19 = vpack.c.bf16 %v1920_v31, %v1918_v25  ;;  %v3150_v25 = vld [vmem:[#allocation5 + $0x100] ss:$0 sm:$0xff] }
 0xbdb   :  { %2892 = vmatmul.msk.bf16.vlgmr.msra.gmra.mxu3 %vm593_vm11, %v1923_v19 }
 0xbde   :  { %v1965_v22 = vpop.f32.mrf.mxu2 }
 0xbe0   :  { %v2008_v34 = vpop.f32.mrf.mxu0 }
 0xbe6   :  { %v1967_v36 = vpop.f32.mrf.mxu2 }
 0xbe8   :  { %v2010_v18 = vpop.f32.mrf.mxu0 }
 0xbe9   :  { %v2013_v37 = vpack.c.bf16 %v2010_v18, %v2008_v34 }
 0xbeb   :  { %2894 = vmatmul.msk.bf16.vlgmr.msrb.gmra.mxu1 %vm593_vm11, %v2013_v37  ;;  %v3085_v37 = vld [vmem:[#allocation2 + $0x2d8] sm:$0xff] }
 0xbee   :  { %v2054_v38 = vpop.f32.mrf.mxu2 }
 0xbf6   :  { %v2056_v30 = vpop.f32.mrf.mxu2 }
 0xbf7   :  { %v2059_v32 = vpack.c.bf16 %v2056_v30, %v2054_v38  ;;  %v3093_v38 = vld [vmem:[#allocation2 + $0x318] sm:$0xff]  ;;  %v3084_v30 = vld [vmem:[#allocation2 + $0x2d0] sm:$0xff] }
 0xbf8   :  { %2315 = vmatpush.bf16.msra.mxu2 %v3093_v38 }
 0xbf9   :  { %2896 = vmatmul.msk.bf16.vlgmr.msrb.gmra.mxu3 %vm593_vm11, %v2059_v32  ;;  %v3092_v32 = vld [vmem:[#allocation2 + $0x310] sm:$0xff] }
 0xbfc   :  { %2316 = vmatpush.bf16.msra.mxu2 %v3092_v32 }
 0xc5e   :  { %v1985_v33 = vpop.f32.mrf.mxu3 }
 0xc5f   :  { %v1986_v23 = vadd.f32 %v1985_v33, %v1965_v22  ;;  %v3083_v33 = vld [vmem:[#allocation2 + $0x2c8] sm:$0xff] }
 0xc66   :  { %v1987_v40 = vpop.f32.mrf.mxu3 }
 0xc67   :  { %v1988_v49 = vadd.f32 %v1987_v40, %v1967_v36  ;;  %v3091_v40 = vld [vmem:[#allocation2 + $0x308] sm:$0xff] }
 0xc68   :  { %v2030_v41 = vpop.f32.mrf.mxu1  ;;  %2317 = vmatpush.bf16.msra.mxu2 %v3091_v40 }
 0xc69   :  { %v2035_v42 = vadd.f32 %v2030_v41, %v1986_v23  ;;  %v3151_v23 = vld [vmem:[#allocation5 + $0x108] ss:$0 sm:$0xff] }
 0xc70   :  { %v2032_v48 = vpop.f32.mrf.mxu1 }
 0xc71   :  { %v2036_v12 = vadd.f32 %v2032_v48, %v1988_v49  ;;  %v3105_v48 = vld [vmem:[#allocation2 + $0x378] sm:$0xff]  ;;  %v3104_v49 = vld [vmem:[#allocation2 + $0x370] sm:$0xff] }
 0xc7c   :  { %v2076_v43 = vpop.f32.mrf.mxu3 }
 0xc7d   :  { %v2081_v44 = vadd.f32 %v2076_v43, %v2035_v42 }
 0xc7f   :  { %v2083_v47 = vadd.f32 %v2081_v44, %v3509_v20 }
 0xc81   :  { %v3588_v51 = vadd.f32 %v3149_v45, %v2083_v47  ;;  %v3106_v47 = vld [vmem:[#allocation2 + $0x380] sm:$0xff] }
 0xc82   :  { %2431 = vmatpush.bf16.msra.mxu3 %v3106_v47 }
 0xc83   :  { %v2089_v52 = vmul.f32 %v3588_v51, %v3588_v51 }
 0xc84   :  { %v2078_v53 = vpop.f32.mrf.mxu3 }
 0xc85   :  { %v2082_v55 = vadd.f32 %v2078_v53, %v2036_v12  ;;  %v2091_v56 = vsel %vm159_vm3, %v2089_v52, 0.0  ;;  %v3103_v12 = vld [vmem:[#allocation2 + $0x368] sm:$0xff]  ;;  %v3153_v52 = vld [vmem:[#allocation5 + $0x118] ss:$0 sm:$0xff] }
 0xc86   :  { %2092 = vadd.xlane.f32.xlu0 %v2091_v56  ;;  %2432 = vmatpush.bf16.msra.mxu3 %v3105_v48  ;;  %v3102_v53 = vld [vmem:[#allocation2 + $0x360] sm:$0xff] }
 0xc87   :  { %v2084_v57 = vadd.f32 %v2082_v55, %v3515_v28  ;;  %v3089_v28 = vld [vmem:[#allocation2 + $0x2f8] sm:$0xff] }
 0xc88   :  { %2231 = vmatpush.bf16.msra.mxu1 %v3089_v28 }
 0xc89   :  { %v3594_v29 = vadd.f32 %v3149_v45, %v2084_v57 }
 0xc8a   :  { %2433 = vmatpush.bf16.msra.mxu3 %v3104_v49  ;;  %v3259_v49 = vld [vmem:[#allocation2 + $0x20] sm:$0xff] }
 0xc8b   :  { %v2090_v20 = vmul.f32 %v3594_v29, %v3594_v29 }
 0xc8c   :  { %2232 = vmatpush.bf16.msra.mxu1 %v3088_v5 }
 0xc8d   :  { %v2094_v46 = vsel %vm159_vm3, %v2090_v20, 0.0  ;;  %v3101_v20 = vld [vmem:[#allocation2 + $0x358] sm:$0xff] }
 0xc8e   :  { %2095 = vadd.xlane.f32.xlu1 %v2094_v46  ;;  %2434 = vmatpush.bf16.msra.mxu3 %v3103_v12  ;;  %v2493_v12 = vsel %vm159_vm3, %v3259_v49, 0 }
 0xc90   :  { %2233 = vmatpush.bf16.msra.mxu1 %v3087_v9 }
 0xc92   :  { %2435 = vmatpush.bf16.msra.mxu3 %v3102_v53 }
 0xc94   :  { %2234 = vmatpush.bf16.msra.mxu1 %v3086_v15 }
 0xc96   :  { %2436 = vmatpush.bf16.msra.mxu3 %v3101_v20  ;;  %v3260_v20 = vld [vmem:[#allocation2 + $0x18] sm:$0xff] }
 0xc98   :  { %2235 = vmatpush.bf16.msra.mxu1 %v3085_v37 }
 0xc9a   :  { %2437 = vmatpush.bf16.msra.mxu3 %v3100_v58 }
 0xc9c   :  { %2236 = vmatpush.bf16.msra.mxu1 %v3084_v30  ;;  %v3256_v30 = vld [vmem:[#allocation2 + $0x38] sm:$0xff] }
 0xc9d   :  { %v2502_v32 = vsel %vm159_vm3, %v3256_v30, 0 }
 0xc9e   :  { %2504 = vmatpush.bf16.xpose.msra.mxu0 %v2502_v32 }
 0xca0   :  { %2237 = vmatpush.bf16.msra.mxu1 %v3083_v33  ;;  %v3257_v33 = vld [vmem:[#allocation2 + $0x30] sm:$0xff] }
 0xca1   :  { %v2499_v40 = vsel %vm159_vm3, %v3257_v33, 0 }
 0xca6   :  { %2505 = vmatpush.bf16.xpose.msra.mxu0 %v2499_v40 }
 0xcf9   :  { %v2093_v59 = vpop.xlane.xlu0 %2092 }
 0xcfa   :  { %v2097_v13 = vmul.f32 %v2093_v59, %v3400_v35 }
 0xcfc   :  { %v2099_v61 = vadd.f32 1e-06, %v2097_v13 }
 0xcfe   :  { %3242 = vrsqrt.f32 %v2099_v61  ;;  %vm2107_vm12 = vweird.f32 %v2099_v61 }
 0xd01   :  { %v2096_v1 = vpop.xlane.xlu1 %2095 }
 0xd02   :  { %v2098_v2 = vmul.f32 %v2096_v1, %v3400_v35 }
 0xd04   :  { %v3243_v3 = vpop.eup %3242  ;;  %v2100_v4 = vadd.f32 1e-06, %v2098_v2 }
 0xd05   :  { %v2102_v7 = vmul.f32 %v3243_v3, %v2099_v61  ;;  %vm2108_vm11 = vweird.f32 %v3243_v3  ;;  %v3099_v61 = vld [vmem:[#allocation2 + $0x348] sm:$0xff] }
 0xd06   :  { %3244 = vrsqrt.f32 %v2100_v4  ;;  %vm2109_vm0 = vmor %vm2107_vm12, %vm2108_vm11  ;;  %vm2117_vm1 = vweird.f32 %v2100_v4  ;;  %2438 = vmatpush.bf16.msra.mxu3 %v3099_v61  ;;  %vm2456_vm11 = vcmask 254976  }
 0xd07   :  { %v2103_v50 = vmul.f32 %v3243_v3, %v2102_v7 }
 0xd09   :  { %v2104_v11 = vmul.f32 0.5, %v2103_v50 }
 0xd0b   :  { %v2105_v14 = vsub.f32 1.5, %v2104_v11 }
 0xd0c   :  { %v3245_v39 = vpop.eup %3244 }
 0xd0d   :  { %v2112_v17 = vmul.f32 %v3245_v39, %v2100_v4  ;;  %v2106_v54 = vmul.f32 %v3243_v3, %v2105_v14  ;;  %vm2118_vm15 = vweird.f32 %v3245_v39 }
 0xd0e   :  { %vm2119_vm2 = vmor %vm2117_vm1, %vm2118_vm15 }
 0xd0f   :  { %v2113_v21 = vmul.f32 %v3245_v39, %v2112_v17  ;;  %v2110_v26 = vsel %vm2109_vm0, %v3243_v3, %v2106_v54 }
 0xd10   :  { %v2121_v31 = vmul.f32 %v2110_v26, %v3588_v51 }
 0xd11   :  { %v2114_v24 = vmul.f32 0.5, %v2113_v21 }
 0xd12   :  { %v2125_v34 = vmul.f32 %v3150_v25, %v2121_v31 }
 0xd13   :  { %v2115_v8 = vsub.f32 1.5, %v2114_v24  ;;  %v3152_v24 = vld [vmem:[#allocation5 + $0x110] ss:$0 sm:$0xff] }
 0xd15   :  { %v2116_v27 = vmul.f32 %v3245_v39, %v2115_v8 }
 0xd17   :  { %v2120_v19 = vsel %vm2119_vm2, %v3245_v39, %v2116_v27 }
 0xd18   :  { %v2122_v22 = vmul.f32 %v2120_v19, %v3594_v29 }
 0xd1a   :  { %v2126_v36 = vmul.f32 %v3150_v25, %v2122_v22 }
 0xd1c   :  { %v2127_v18 = vpack.c.bf16 %v2126_v36, %v2125_v34 }
 0xd1e   :  { %2905 = vmatmul.msk.bf16.vlgmr.msrb.gmra.mxu0 %vm159_vm3, %v2127_v18 }
 0xd9b   :  { %v2158_v41 = vpop.f32.mrf.mxu0 }
 0xd9c   :  { %v2159_v43 = vadd.f32 %v3151_v23, %v2158_v41 }
 0xda3   :  { %v2160_v42 = vpop.f32.mrf.mxu0 }
 0xda4   :  { %v2161_v44 = vadd.f32 %v3151_v23, %v2160_v42  ;;  %v3154_v23 = vld [vmem:[#allocation5 + $0x120] ss:$0 sm:$0xff] }
 0xda5   :  { %v3258_v42 = vld [vmem:[#allocation2 + $0x28] sm:$0xff] }
 0xda6   :  { %v2163_v45 = vpack.c.bf16 %v2161_v44, %v2159_v43  ;;  %v2496_v43 = vsel %vm159_vm3, %v3258_v42, 0 }
 0xda7   :  { %2506 = vmatpush.bf16.xpose.msra.mxu0 %v2496_v43 }
 0xda8   :  { %2238 = vmatmul.bf16.vlgmr.msra.gmra.mxu1 %v2163_v45  ;;  %2318 = vmatmul.bf16.vlgmr.msra.gmra.mxu2 %v2163_v45 }
 0xdaf   :  { %2507 = vmatpush.bf16.xpose.msra.mxu0 %v2493_v12 }
 0xe25   :  { %v2239_v6 = vpop.f32.mrf.mxu1 }
 0xe26   :  { %v2240_v22 = vadd.f32 %v3152_v24, %v2239_v6  ;;  %v3155_v6 = vld [vmem:[#allocation5] ss:$0 sm:$0xff] }
 0xe2b   :  { %v2319_v55 = vpop.f32.mrf.mxu2 }
 0xe2c   :  { %v2320_v56 = vadd.f32 %v3153_v52, %v2319_v55 }
 0xe2d   :  { %v2241_v8 = vpop.f32.mrf.mxu1 }
 0xe2e   :  { %v2324_v57 = vsub.f32 0.0, %v2320_v56  ;;  %v2242_v34 = vadd.f32 %v3152_v24, %v2241_v8 }
 0xe30   :  { %v2326_v46 = vmul.f32 1.442695, %v2324_v57 }
 0xe32   :  { %3246 = vpow2.f32 %v2326_v46  ;;  %v2490_v46 = vsel %vm159_vm3, %v3260_v20, 0 }
 0xe33   :  { %v2321_v59 = vpop.f32.mrf.mxu2  ;;  %2508 = vmatpush.bf16.xpose.msra.mxu0 %v2490_v46 }
 0xe34   :  { %v2322_v13 = vadd.f32 %v3153_v52, %v2321_v59 }
 0xe36   :  { %v2325_v60 = vsub.f32 0.0, %v2322_v13 }
 0xe38   :  { %v3247_v62 = vpop.eup %3246  ;;  %v2328_v63 = vmul.f32 1.442695, %v2325_v60  ;;  %v3263_v60 = vld [vmem:[#allocation2] sm:$0xff] }
 0xe39   :  { %v2330_v28 = vadd.f32 1.0, %v3247_v62  ;;  %v2481_v61 = vsel %vm159_vm3, %v3263_v60, 0 }
 0xe3a   :  { %3248 = vpow2.f32 %v2328_v63 }
 0xe3b   :  { %3250 = vrcp.f32 %v2330_v28  ;;  %v2343_v9 = vand.u32 2147483648, %v2330_v28  ;;  %vm2337_vm5 = vweird.f32 %v2330_v28  ;;  %v2341_v10 = vand.u32 2147483647, %v2330_v28 }
 0xe3d   :  { %v2344_v15 = vor.u32 1.1754944e-38, %v2343_v9  ;;  %vm2342_vm7 = vcmp.eq.f32.partialorder %v2341_v10, 8.507059e+37 }
 0xe40   :  { %v3249_v0 = vpop.eup %3248 }
 0xe41   :  { %v3251_v1 = vpop.eup %3250  ;;  %v2331_v2 = vadd.f32 1.0, %v3249_v0 }
 0xe42   :  { %v2333_v3 = vmul.f32 %v3251_v1, %v2330_v28  ;;  %vm2338_vm4 = vweird.f32 %v3251_v1 }
 0xe43   :  { %3252 = vrcp.f32 %v2331_v2  ;;  %vm2339_vm6 = vmor %vm2337_vm5, %vm2338_vm4  ;;  %v2358_v16 = vand.u32 2147483648, %v2331_v2  ;;  %v2356_v54 = vand.u32 2147483647, %v2331_v2  ;;  %vm2352_vm9 = vweird.f32 %v2331_v2 }
 0xe44   :  { %v2334_v4 = vsub.f32 1.0, %v2333_v3 }
 0xe45   :  { %v2359_v27 = vor.u32 1.1754944e-38, %v2358_v16  ;;  %vm2357_vm13 = vcmp.eq.f32.partialorder %v2356_v54, 8.507059e+37 }
 0xe46   :  { %v2335_v5 = vmul.f32 %v3251_v1, %v2334_v4 }
 0xe48   :  { %v2336_v7 = vadd.f32 %v3251_v1, %v2335_v5 }
 0xe49   :  { %v3253_v50 = vpop.eup %3252 }
 0xe4a   :  { %v2348_v11 = vmul.f32 %v3253_v50, %v2331_v2  ;;  %v2340_v14 = vsel %vm2339_vm6, %v3251_v1, %v2336_v7  ;;  %vm2353_vm8 = vweird.f32 %v3253_v50 }
 0xe4b   :  { %v2345_v21 = vsel %vm2342_vm7, %v2344_v15, %v2340_v14  ;;  %vm2354_vm10 = vmor %vm2352_vm9, %vm2353_vm8 }
 0xe4c   :  { %v2349_v39 = vsub.f32 1.0, %v2348_v11  ;;  %v2346_v25 = vmul.f32 %v2345_v21, %v2320_v56 }
 0xe4e   :  { %v2350_v17 = vmul.f32 %v3253_v50, %v2349_v39  ;;  %v2362_v18 = vmul.f32 %v2346_v25, %v2240_v22 }
 0xe50   :  { %v2351_v26 = vadd.f32 %v3253_v50, %v2350_v17 }
 0xe52   :  { %v2355_v31 = vsel %vm2354_vm10, %v3253_v50, %v2351_v26 }
 0xe53   :  { %v2360_v19 = vsel %vm2357_vm13, %v2359_v27, %v2355_v31 }
 0xe54   :  { %v2361_v36 = vmul.f32 %v2360_v19, %v2322_v13  ;;  %v3262_v13 = vld [vmem:[#allocation2 + $0x8] sm:$0xff] }
 0xe56   :  { %v2363_v37 = vmul.f32 %v2361_v36, %v2242_v34 }
 0xe58   :  { %v2364_v38 = vpack.c.bf16 %v2363_v37, %v2362_v18 }
 0xe5a   :  { %2439 = vmatmul.bf16.vlgmr.msra.gmra.mxu3 %v2364_v38 }
 0xedd   :  { %v2440_v41 = vpop.f32.mrf.mxu3 }
 0xede   :  { %v2441_v44 = vadd.f32 %v3154_v23, %v2440_v41 }
 0xee0   :  { %v2445_v47 = vadd.f32 %v2441_v44, %v3588_v51  ;;  %v3261_v51 = vld [vmem:[#allocation2 + $0x10] sm:$0xff] }
 0xee1   :  { %v2487_v59 = vsel %vm159_vm3, %v3261_v51, 0 }
 0xee2   :  { %v2448_v53 = vrot.slane %v2445_v47, 7  ;;  %2509 = vmatpush.bf16.xpose.msra.mxu0 %v2487_v59 }
 0xee5   :  { %v2442_v45 = vpop.f32.mrf.mxu3 }
 0xee6   :  { %v2443_v48 = vadd.f32 %v3154_v23, %v2442_v45 }
 0xee8   :  { %v2446_v52 = vadd.f32 %v2443_v48, %v3594_v29  ;;  %v2484_v29 = vsel %vm159_vm3, %v3262_v13, 0 }
 0xeea   :  { %v2451_v55 = vrot.slane %v2446_v52, 6  ;;  %2510 = vmatpush.bf16.xpose.msra.mxu0 %v2484_v29 }
 0xeec   :  { %v2454_v56 = vsel %vm2453_vm14, %v2448_v53, %v2451_v55 }
 0xeed   :  { %v2455_v57 = vmul.f32 %v2454_v56, %v2454_v56 }
 0xeef   :  { %v2457_v58 = vsel %vm2456_vm11, %v2455_v57, 0.0 }
 0xef0   :  { %2458 = vadd.xlane.f32.xlu2 %v2457_v58 }
 0xef2   :  { %2511 = vmatpush.bf16.xpose.msra.mxu0 %v2481_v61 }
 0xf63   :  { %v2459_v62 = vpop.xlane.xlu2 %2458 }
 0xf64   :  { %v2460_v63 = vmul.f32 %v2459_v62, %v3400_v35 }
 0xf66   :  { %v2461_v28 = vadd.f32 1e-06, %v2460_v63 }
 0xf68   :  { %3254 = vrsqrt.f32 %v2461_v28  ;;  %vm2468_vm0 = vweird.f32 %v2461_v28 }
 0xf6e   :  { %v3255_v0 = vpop.eup %3254 }
 0xf6f   :  { %v2463_v1 = vmul.f32 %v3255_v0, %v2461_v28  ;;  %vm2469_vm12 = vweird.f32 %v3255_v0 }
 0xf70   :  { %vm2470_vm15 = vmor %vm2468_vm0, %vm2469_vm12 }
 0xf71   :  { %v2464_v2 = vmul.f32 %v3255_v0, %v2463_v1 }
 0xf73   :  { %v2465_v3 = vmul.f32 0.5, %v2464_v2 }
 0xf75   :  { %v2466_v4 = vsub.f32 1.5, %v2465_v3 }
 0xf77   :  { %v2467_v5 = vmul.f32 %v3255_v0, %v2466_v4 }
 0xf79   :  { %v2471_v7 = vsel %vm2470_vm15, %v3255_v0, %v2467_v5 }
 0xf7a   :  { %v2472_v50 = vmul.f32 %v2471_v7, %v2454_v56 }
 0xf7c   :  { %v2475_v9 = vmul.f32 %v3155_v6, %v2472_v50 }
 0xf7e   :  { %v2476_v10 = vpack.c.bf16 %v2475_v9, %v2475_v9 }
 0xf80   :  { %3002 = vmatmul.msk.bf16.vlgmr.msra.gmra.mxu0 %vm159_vm3, %v2476_v10 }
 0xffd   :  { %v2513_v35 = vpop.f32.mrf.mxu0 }
 0xffe   :  { %2517 = vst [vmem:[#allocation7] sm:$0x3] %v2513_v35 }
 0xfff   :  { %2528 = dma.vmem_to_hbm [thread:$0]  %s2524_s28, 32, %s2526_s4, [#allocation4]  }
0x1005   :  { %v2515_v11 = vpop.f32.mrf.mxu0 }
0x1006   :  { %3340 = dma.done.wait [#allocation4], 32  }
0x1007   :  { %3341 = vsyncadd [#allocation4], 4294967264 }
0x1008   :  { %2533 = vsyncpa [#allocation3], 1 }
0x1009   :  { %2534 = vsyncpa [#allocation6], 1 }
0x100a   :  { %2535 = vsyncpa [#allocation4], 1 }

</bundles_post_ra>
